<compile_context>
chip_gen: v5e
topology: v5e:2x2
jax: 0.10.0
libtpu: 0.0.40
codegen_flags: <defaults>
</compile_context>

<pallas_src>
import functools

import jax
import jax.numpy as jnp
from jax.experimental import pallas as pl
from jax.experimental.pallas import tpu as pltpu

_LANE = 128


# ---------------------------------------------------------------------------
# Pallas kernels
# ---------------------------------------------------------------------------
def _combine_phase_stats(s1, s2, cout, phases):
    """Sum per-channel stats over the `phases` sub-pixel phase channels that map
    to the same output channel (channel index q = p*cout + co) and broadcast the
    combined value back to all q.  Done with a tiny constant 0/1 matmul."""
    if phases == 1:
        return s1, s2
    cp = s1.shape[0]
    r = jax.lax.broadcasted_iota(jnp.int32, (cp, cp), 0) % cout
    c = jax.lax.broadcasted_iota(jnp.int32, (cp, cp), 1) % cout
    g = (r == c).astype(jnp.float32)
    return (jnp.dot(g, s1, preferred_element_type=jnp.float32),
            jnp.dot(g, s2, preferred_element_type=jnp.float32))


def _conv_kernel(x_ref, w_ref, b_ref, alpha_ref, y_ref, s1_ref, s2_ref, *,
                 hw, tile, cout, phases, fuse_norm, need_stats):
    """One (batch, HW-tile) grid step.

    x_ref: (1, K, tile) bf16 patches     w_ref: (C', K) bf16
    b_ref: (C', 1) f32                   alpha_ref: (1,) f32 in SMEM
    y_ref: (1, C', tile) f32             s1/s2_ref: (1, C', 1) f32 stat accumulators
    """
    t = pl.program_id(1)
    # Lane-dense matmul: (C', K) @ (K, tile) -> (C', tile); f32 accumulate.
    y = jnp.dot(w_ref[...], x_ref[0],
                preferred_element_type=jnp.float32) + b_ref[...]

    if fuse_norm or need_stats:
        if hw % tile == 0:                      # no padded lanes in this layer
            ym = y
        else:                                   # mask padded columns out of stats
            lane = jax.lax.broadcasted_iota(jnp.int32, y.shape, 1) + t * tile
            ym = jnp.where(lane < hw, y, 0.0)
        s1 = jnp.sum(ym, axis=1, keepdims=True)          # (C', 1)
        s2 = jnp.sum(ym * ym, axis=1, keepdims=True)     # (C', 1)

    if fuse_norm:
        # Whole image lives in this single tile -> stats are complete:
        # fuse InstanceNorm (biased var, eps=1e-5) + PReLU right here.
        s1c, s2c = _combine_phase_stats(s1, s2, cout, phases)
        cnt = float(phases * hw)
        mean = s1c / cnt
        var = s2c / cnt - mean * mean
        yn = (y - mean) * jax.lax.rsqrt(var + 1e-5)
        a = alpha_ref[0]
        y_ref[0] = jnp.where(yn >= 0.0, yn, a * yn)
        s1_ref[0] = s1
        s2_ref[0] = s2
    else:
        y_ref[0] = y
        if need_stats:
            @pl.when(t == 0)
            def _():
                s1_ref[0] = jnp.zeros_like(s1_ref[0])
                s2_ref[0] = jnp.zeros_like(s2_ref[0])
            s1_ref[0] = s1_ref[0] + s1
            s2_ref[0] = s2_ref[0] + s2


def _norm_prelu_kernel(y_ref, s1_ref, s2_ref, alpha_ref, o_ref, *,
                       hw, cout, phases):
    """Second pass (only when HW is tiled): apply InstanceNorm + PReLU using the
    per-sample per-channel stats accumulated across all HW tiles."""
    y = y_ref[0]                                          # (C', tile)
    s1c, s2c = _combine_phase_stats(s1_ref[0], s2_ref[0], cout, phases)
    cnt = float(phases * hw)
    mean = s1c / cnt
    var = s2c / cnt - mean * mean
    yn = (y - mean) * jax.lax.rsqrt(var + 1e-5)
    a = alpha_ref[0]
    o_ref[0] = jnp.where(yn >= 0.0, yn, a * yn)


# ---------------------------------------------------------------------------
# pallas_call wrapper: conv-as-matmul with HW tiling + fused/split InstanceNorm
# ---------------------------------------------------------------------------
def _run_conv(patches, w2d, b, alpha, *, cout, phases, tile_cfg):
    """patches: (N, K, HW) f32.  w2d: (C', K) f32.  b: (C',) f32.
    alpha: (1,) f32 PReLU slope or None (conv only).
    Returns (N, C', HW) f32, normalized + activated if alpha is given."""
    tile_hw, tile_hw_max = tile_cfg
    N, K, HW = patches.shape
    Cp = w2d.shape[0]

    if HW <= tile_hw_max:                       # whole image in one lane block
        tile, T, HWp = HW, 1, HW
    else:                                       # tile HW on a grid axis
        tile = max(_LANE, (tile_hw // _LANE) * _LANE)
        HWp = ((HW + tile - 1) // tile) * tile
        T = HWp // tile
        if HWp != HW:
            patches = jnp.pad(patches, ((0, 0), (0, 0), (0, HWp - HW)))

    # bf16 operands for the MXU; epilogue stays in f32.
    xb = patches.astype(jnp.bfloat16)
    wb = w2d.astype(jnp.bfloat16)
    b2 = b.reshape(Cp, 1).astype(jnp.float32)
    a = alpha if alpha is not None else jnp.zeros((1,), jnp.float32)

    need_stats = alpha is not None
    fuse_norm = need_stats and (T == 1)

    # VMEM budget derived from the chosen tile (double-buffered in/out + weights).
    blk = (2 * (K * tile * 2) + 2 * (Cp * K * 2) + 2 * (Cp * 4)
           + 2 * (Cp * tile * 4) + 4 * (Cp * 4))
    vmem_limit = int(min(max(4 * blk, 8 * 1024 * 1024), 48 * 1024 * 1024))
    cost = pl.CostEstimate(
        flops=2 * N * Cp * K * HWp,
        transcendentals=0,
        bytes_accessed=N * (K * HWp * 2 + Cp * HWp * 4) + Cp * K * 2)

    kern = functools.partial(_conv_kernel, hw=HW, tile=tile, cout=cout,
                             phases=phases, fuse_norm=fuse_norm,
                             need_stats=need_stats)
    y, s1, s2 = pl.pallas_call(
        kern,
        out_shape=(jax.ShapeDtypeStruct((N, Cp, HWp), jnp.float32),
                   jax.ShapeDtypeStruct((N, Cp, 1), jnp.float32),
                   jax.ShapeDtypeStruct((N, Cp, 1), jnp.float32)),
        grid=(N, T),
        in_specs=[
            pl.BlockSpec((1, K, tile), lambda n, t: (n, 0, t)),
            pl.BlockSpec((Cp, K), lambda n, t: (0, 0)),
            pl.BlockSpec((Cp, 1), lambda n, t: (0, 0)),
            pl.BlockSpec(memory_space=pltpu.MemorySpace.SMEM),
        ],
        out_specs=(
            pl.BlockSpec((1, Cp, tile), lambda n, t: (n, 0, t)),
            pl.BlockSpec((1, Cp, 1), lambda n, t: (n, 0, 0)),   # stat accumulators
            pl.BlockSpec((1, Cp, 1), lambda n, t: (n, 0, 0)),   # resident across t
        ),
        compiler_params=pltpu.CompilerParams(
            dimension_semantics=("parallel", "arbitrary"),
            vmem_limit_bytes=vmem_limit),
        cost_estimate=cost,
    )(xb, wb, b2, a)

    if need_stats and not fuse_norm:
        # Second lightweight sweep: normalize + PReLU with the complete stats.
        kern_b = functools.partial(_norm_prelu_kernel, hw=HW, cout=cout,
                                   phases=phases)
        y = pl.pallas_call(
            kern_b,
            out_shape=jax.ShapeDtypeStruct((N, Cp, HWp), jnp.float32),
            grid=(N, T),
            in_specs=[
                pl.BlockSpec((1, Cp, tile), lambda n, t: (n, 0, t)),
                pl.BlockSpec((1, Cp, 1), lambda n, t: (n, 0, 0)),
                pl.BlockSpec((1, Cp, 1), lambda n, t: (n, 0, 0)),
                pl.BlockSpec(memory_space=pltpu.MemorySpace.SMEM),
            ],
            out_specs=pl.BlockSpec((1, Cp, tile), lambda n, t: (n, 0, t)),
            compiler_params=pltpu.CompilerParams(
                dimension_semantics=("parallel", "parallel"),
                vmem_limit_bytes=vmem_limit),
        )(y, s1, s2, a)

    if HWp != HW:
        y = y[:, :, :HW]
    return y


# ---------------------------------------------------------------------------
# JAX glue: patch extraction (K-major, HW on lanes) and layer wrappers
# ---------------------------------------------------------------------------
def _im2col(x, k, stride, padding):
    """x: (N, C, H, W) -> patches (N, C*k*k, Ho*Wo), plus (Ho, Wo)."""
    N, C, H, W = x.shape
    xp = jnp.pad(x, ((0, 0), (0, 0), (padding, padding), (padding, padding)))
    Ho = (H + 2 * padding - k) // stride + 1
    Wo = (W + 2 * padding - k) // stride + 1
    cols = []
    for i in range(k):
        for j in range(k):
            cols.append(xp[:, :, i:i + stride * Ho:stride, j:j + stride * Wo:stride])
    cols = jnp.stack(cols, axis=2)                 # (N, C, k*k, Ho, Wo)
    return cols.reshape(N, C * k * k, Ho * Wo), Ho, Wo


def _conv_layer(x, w, b, alpha, stride, tile_cfg):
    """Conv2d(k=3, stride, padding=1) [+ InstanceNorm + PReLU if alpha given]."""
    N, Cin, _, _ = x.shape
    cout = w.shape[0]
    patches, Ho, Wo = _im2col(x, 3, stride, 1)
    w2d = w.reshape(cout, Cin * 9)
    y = _run_conv(patches, w2d, b, alpha, cout=cout, phases=1, tile_cfg=tile_cfg)
    return y.reshape(N, cout, Ho, Wo)


def _up_layer(x, wt, b, alpha, tile_cfg):
    """ConvTranspose2d(k=3, stride=2, padding=1, output_padding=1)
    [+ InstanceNorm + PReLU if alpha given], via sub-pixel decomposition:
    one 2x2 stride-1 conv with 4*cout output channels + depth-to-space."""
    N, Cin, H, W = x.shape
    cout = wt.shape[1]                               # PyTorch layout (Cin, Cout, 3, 3)
    wT = wt.transpose(1, 0, 2, 3)                    # (cout, Cin, 3, 3)
    z = jnp.zeros((cout, Cin), wt.dtype)
    tap = lambda ky, kx: wT[:, :, ky, kx]            # (cout, Cin)
    # Phase p = py*2+px reads input taps x[a+dy, b+dx] (tap index = dy*2+dx):
    #   out[2a+py, 2b+px] = sum_taps w_sub[p, :, :, tap] * x[a+dy, b+dx]
    w_sub = jnp.stack([
        jnp.stack([tap(1, 1), z,          z,          z         ], axis=2),  # (0,0)
        jnp.stack([tap(1, 2), tap(1, 0),  z,          z         ], axis=2),  # (0,1)
        jnp.stack([tap(2, 1), z,          tap(0, 1),  z         ], axis=2),  # (1,0)
        jnp.stack([tap(2, 2), tap(2, 0),  tap(0, 2),  tap(0, 0) ], axis=2),  # (1,1)
    ], axis=0)                                       # (4, cout, Cin, 4)
    w2d = w_sub.reshape(4 * cout, Cin * 4)
    b_sub = jnp.tile(b, 4)                           # bias per phase channel

    xp = jnp.pad(x, ((0, 0), (0, 0), (0, 1), (0, 1)))    # high-side halo only
    patches, _, _ = _im2col(xp, 2, 1, 0)             # (N, Cin*4, H*W)
    y = _run_conv(patches, w2d, b_sub, alpha, cout=cout, phases=4,
                  tile_cfg=tile_cfg)                 # (N, 4*cout, H*W)
    # depth-to-space (pixel shuffle): phase channels -> 2x upsampled spatial
    y = y.reshape(N, 2, 2, cout, H, W)
    y = y.transpose(0, 3, 4, 1, 5, 2).reshape(N, cout, 2 * H, 2 * W)
    return y


# ---------------------------------------------------------------------------
# UNet forward: channels=(4,8,16), strides=(2,2), in=1, out=1, num_res_units=0
# ---------------------------------------------------------------------------
def unet_forward(x, p, *, tile_hw=1024, tile_hw_max=4096):
    cfg = (tile_hw, tile_hw_max)
    # encode
    h1 = _conv_layer(x,  p["w_d1"], p["b_d1"], p["a_d1"], 2, cfg)   # (N, 4, H/2, W/2)
    h2 = _conv_layer(h1, p["w_d2"], p["b_d2"], p["a_d2"], 2, cfg)   # (N, 8, H/4, W/4)
    # bottom (stride 1) + Swivel (identity)
    h3 = _conv_layer(h2, p["w_bt"], p["b_bt"], p["a_bt"], 1, cfg)   # (N,16, H/4, W/4)
    # inner skip (channel concat) -> inner up layer (transpose conv + ADN)
    c2 = jnp.concatenate([h2, h3], axis=1)                          # (N,24, H/4, W/4)
    u2 = _up_layer(c2, p["w_u2"], p["b_u2"], p["a_u2"], cfg)        # (N, 4, H/2, W/2)
    # outer skip -> top up layer (transpose conv only: is_top & num_res_units==0)
    c1 = jnp.concatenate([h1, u2], axis=1)                          # (N, 8, H/2, W/2)
    out = _up_layer(c1, p["w_u1"], p["b_u1"], None, cfg)            # (N, 1, H, W)
    return out


def init_params(key):
    ks = jax.random.split(key, 10)
    f32 = jnp.float32
    return {
        # down layer 1: Conv 1 -> 4, stride 2
        "w_d1": 0.1 * jax.random.normal(ks[0], (4, 1, 3, 3), f32),
        "b_d1": 0.1 * jax.random.normal(ks[1], (4,), f32),
        "a_d1": jnp.full((1,), 0.25, f32),
        # down layer 2: Conv 4 -> 8, stride 2
        "w_d2": 0.1 * jax.random.normal(ks[2], (8, 4, 3, 3), f32),
        "b_d2": 0.1 * jax.random.normal(ks[3], (8,), f32),
        "a_d2": jnp.full((1,), 0.25, f32),
        # bottom: Conv 8 -> 16, stride 1
        "w_bt": 0.1 * jax.random.normal(ks[4], (16, 8, 3, 3), f32),
        "b_bt": 0.1 * jax.random.normal(ks[5], (16,), f32),
        "a_bt": jnp.full((1,), 0.25, f32),
        # up layer 2: ConvTranspose 24 -> 4, stride 2 (PyTorch layout: in,out,k,k)
        "w_u2": 0.1 * jax.random.normal(ks[6], (24, 4, 3, 3), f32),
        "b_u2": 0.1 * jax.random.normal(ks[7], (4,), f32),
        "a_u2": jnp.full((1,), 0.25, f32),
        # up layer 1 (top, conv only): ConvTranspose 8 -> 1, stride 2
        "w_u1": 0.1 * jax.random.normal(ks[8], (8, 1, 3, 3), f32),
        "b_u1": 0.1 * jax.random.normal(ks[9], (1,), f32),
    }


if __name__ == "__main__":
    key = jax.random.PRNGKey(0)
    kx, kp = jax.random.split(key)
    params = init_params(kp)

    # NCHW input, spatial size multiple of 2^2 = 4 (small test shape).
    x = jax.random.normal(kx, (2, 1, 16, 16), jnp.float32)
    fwd = jax.jit(functools.partial(unet_forward, tile_hw=1024, tile_hw_max=4096))
    y = jax.block_until_ready(fwd(x, params))
    assert y.shape == (2, 1, 16, 16), y.shape
    assert bool(jnp.all(jnp.isfinite(y)))

    # Also exercise the HW-tiled path (cross-tile InstanceNorm accumulation +
    # second normalization sweep) and check it agrees with the fused path.
    x2 = jax.random.normal(kx, (2, 1, 32, 32), jnp.float32)
    y_fused = jax.block_until_ready(
        jax.jit(functools.partial(unet_forward, tile_hw=4096, tile_hw_max=4096))(x2, params))
    y_tiled = jax.block_until_ready(
        jax.jit(functools.partial(unet_forward, tile_hw=128, tile_hw_max=128))(x2, params))
    assert y_fused.shape == (2, 1, 32, 32), y_fused.shape
    assert bool(jnp.all(jnp.isfinite(y_tiled)))
    assert bool(jnp.allclose(y_fused, y_tiled, rtol=1e-2, atol=1e-2)), (
        float(jnp.max(jnp.abs(y_fused - y_tiled))))

    print("KERNEL_OK")
</pallas_src>

<mosaic_0001>
module attributes {stable_mosaic.version = 11 : i64} {
  func.func @_conv_kernel(%arg0: i32, %arg1: i32, %arg2: memref<1x9x64xbf16, #tpu.memory_space<vmem>>, %arg3: memref<4x9xbf16, #tpu.memory_space<vmem>>, %arg4: memref<4x1xf32, #tpu.memory_space<vmem>>, %arg5: memref<1xf32, #tpu.memory_space<smem>>, %arg6: memref<1x4x64xf32, #tpu.memory_space<vmem>>, %arg7: memref<1x4x1xf32, #tpu.memory_space<vmem>>, %arg8: memref<1x4x1xf32, #tpu.memory_space<vmem>>) attributes {dimension_semantics = [#tpu.dimension_semantics<parallel>, #tpu.dimension_semantics<arbitrary>], iteration_bounds = array<i64: 2, 1>, scalar_prefetch = 0 : i64, scratch_operands = 0 : i64, tpu.core_type = #tpu.core_type<tc>, window_params = [{transform_indices = @transform_0, window_bounds = array<i64: 1, 9, 64>}, {pipeline_mode = #tpu.pipeline_mode<synchronous>, transform_indices = @transform_1, window_bounds = array<i64: 4, 9>}, {pipeline_mode = #tpu.pipeline_mode<synchronous>, transform_indices = @transform_2, window_bounds = array<i64: 4, 1>}, {transform_indices = @transform_3, window_bounds = array<i64: 1>}, {transform_indices = @transform_4, window_bounds = array<i64: 1, 4, 64>}, {transform_indices = @transform_5, window_bounds = array<i64: 1, 4, 1>}, {transform_indices = @transform_6, window_bounds = array<i64: 1, 4, 1>}]} {
    %c0 = arith.constant 0 : index
    %c0_0 = arith.constant 0 : index
    %0 = vector.load %arg3[%c0, %c0_0] : memref<4x9xbf16, #tpu.memory_space<vmem>>, vector<4x9xbf16>
    %c0_1 = arith.constant 0 : index
    %c0_2 = arith.constant 0 : index
    %c0_3 = arith.constant 0 : index
    %1 = vector.load %arg2[%c0_1, %c0_2, %c0_3] : memref<1x9x64xbf16, #tpu.memory_space<vmem>>, vector<1x9x64xbf16>
    %2 = vector.shape_cast %1 : vector<1x9x64xbf16> to vector<9x64xbf16>
    %cst = arith.constant dense<0.000000e+00> : vector<4x64xf32>
    %3 = tpu.matmul %0, %2, %cst {dimension_numbers = #tpu.dot_dimension_numbers<[1], [0], [0], [1], [0, 0, 1, 1], [], []>} : vector<4x9xbf16>, vector<9x64xbf16>, vector<4x64xf32> -> vector<4x64xf32>
    %c0_4 = arith.constant 0 : index
    %c0_5 = arith.constant 0 : index
    %4 = vector.load %arg4[%c0_4, %c0_5] : memref<4x1xf32, #tpu.memory_space<vmem>>, vector<4x1xf32>
    %5 = vector.broadcast %4 : vector<4x1xf32> to vector<4x64xf32>
    %6 = arith.addf %3, %5 : vector<4x64xf32>
    %cst_6 = arith.constant dense<0.000000e+00> : vector<4xf32>
    %7 = vector.multi_reduction <add>, %6, %cst_6 [1] : vector<4x64xf32> to vector<4xf32>
    %8 = vector.shape_cast %7 : vector<4xf32> to vector<4x1xf32>
    %9 = arith.mulf %6, %6 : vector<4x64xf32>
    %cst_7 = arith.constant dense<0.000000e+00> : vector<4xf32>
    %10 = vector.multi_reduction <add>, %9, %cst_7 [1] : vector<4x64xf32> to vector<4xf32>
    %11 = vector.shape_cast %10 : vector<4xf32> to vector<4x1xf32>
    %cst_8 = arith.constant 6.400000e+01 : f32
    %12 = vector.broadcast %cst_8 : f32 to vector<4x1xf32>
    %13 = arith.divf %8, %12 : vector<4x1xf32>
    %cst_9 = arith.constant 6.400000e+01 : f32
    %14 = vector.broadcast %cst_9 : f32 to vector<4x1xf32>
    %15 = arith.divf %11, %14 : vector<4x1xf32>
    %16 = arith.mulf %13, %13 : vector<4x1xf32>
    %17 = arith.subf %15, %16 : vector<4x1xf32>
    %18 = vector.broadcast %13 : vector<4x1xf32> to vector<4x64xf32>
    %19 = arith.subf %6, %18 : vector<4x64xf32>
    %cst_10 = arith.constant 9.99999974E-6 : f32
    %20 = vector.broadcast %cst_10 : f32 to vector<4x1xf32>
    %21 = arith.addf %17, %20 : vector<4x1xf32>
    %22 = math.rsqrt %21 : vector<4x1xf32>
    %23 = vector.broadcast %22 : vector<4x1xf32> to vector<4x64xf32>
    %24 = arith.mulf %19, %23 : vector<4x64xf32>
    %c0_11 = arith.constant 0 : index
    %25 = memref.load %arg5[%c0_11] : memref<1xf32, #tpu.memory_space<smem>>
    %cst_12 = arith.constant 0.000000e+00 : f32
    %26 = vector.broadcast %cst_12 : f32 to vector<4x64xf32>
    %27 = arith.cmpf oge, %24, %26 : vector<4x64xf32>
    %28 = vector.broadcast %25 : f32 to vector<4x64xf32>
    %29 = arith.mulf %28, %24 : vector<4x64xf32>
    %30 = arith.select %27, %24, %29 : vector<4x64xi1>, vector<4x64xf32>
    %c0_13 = arith.constant 0 : index
    %c0_14 = arith.constant 0 : index
    %c0_15 = arith.constant 0 : index
    %31 = vector.load %arg6[%c0_13, %c0_14, %c0_15] : memref<1x4x64xf32, #tpu.memory_space<vmem>>, vector<1x4x64xf32>
    %32 = vector.shape_cast %31 : vector<1x4x64xf32> to vector<4x64xf32>
    %33 = vector.shape_cast %30 : vector<4x64xf32> to vector<1x4x64xf32>
    tpu.vector_store %arg6[%c0_13, %c0_14, %c0_15], %33 {strides = array<i32>} : memref<1x4x64xf32, #tpu.memory_space<vmem>>, vector<1x4x64xf32>,
    %c0_16 = arith.constant 0 : index
    %c0_17 = arith.constant 0 : index
    %c0_18 = arith.constant 0 : index
    %34 = vector.load %arg7[%c0_16, %c0_17, %c0_18] : memref<1x4x1xf32, #tpu.memory_space<vmem>>, vector<1x4x1xf32>
    %35 = vector.shape_cast %34 : vector<1x4x1xf32> to vector<4x1xf32>
    %36 = vector.shape_cast %8 : vector<4x1xf32> to vector<1x4x1xf32>
    tpu.vector_store %arg7[%c0_16, %c0_17, %c0_18], %36 {strides = array<i32>} : memref<1x4x1xf32, #tpu.memory_space<vmem>>, vector<1x4x1xf32>,
    %c0_19 = arith.constant 0 : index
    %c0_20 = arith.constant 0 : index
    %c0_21 = arith.constant 0 : index
    %37 = vector.load %arg8[%c0_19, %c0_20, %c0_21] : memref<1x4x1xf32, #tpu.memory_space<vmem>>, vector<1x4x1xf32>
    %38 = vector.shape_cast %37 : vector<1x4x1xf32> to vector<4x1xf32>
    %39 = vector.shape_cast %11 : vector<4x1xf32> to vector<1x4x1xf32>
    tpu.vector_store %arg8[%c0_19, %c0_20, %c0_21], %39 {strides = array<i32>} : memref<1x4x1xf32, #tpu.memory_space<vmem>>, vector<1x4x1xf32>,
    return
  }
  func.func @transform_0(%arg0: i32, %arg1: i32) -> (i32, i32, i32) {
    %c0_i32 = arith.constant 0 : i32
    %c0_i32_0 = arith.constant 0 : i32
    return %arg0, %c0_i32, %arg1 : i32, i32, i32
  }
  func.func @transform_1(%arg0: i32, %arg1: i32) -> (i32, i32) {
    %c0_i32 = arith.constant 0 : i32
    %c0_i32_0 = arith.constant 0 : i32
    %c0_i32_1 = arith.constant 0 : i32
    return %c0_i32, %c0_i32_0 : i32, i32
  }
  func.func @transform_2(%arg0: i32, %arg1: i32) -> (i32, i32) {
    %c0_i32 = arith.constant 0 : i32
    %c0_i32_0 = arith.constant 0 : i32
    %c0_i32_1 = arith.constant 0 : i32
    return %c0_i32, %c0_i32_0 : i32, i32
  }
  func.func @transform_3(%arg0: i32, %arg1: i32) -> i32 {
    %c0_i32 = arith.constant 0 : i32
    %c0_i32_0 = arith.constant 0 : i32
    return %c0_i32 : i32
  }
  func.func @transform_4(%arg0: i32, %arg1: i32) -> (i32, i32, i32) {
    %c0_i32 = arith.constant 0 : i32
    %c0_i32_0 = arith.constant 0 : i32
    return %arg0, %c0_i32, %arg1 : i32, i32, i32
  }
  func.func @transform_5(%arg0: i32, %arg1: i32) -> (i32, i32, i32) {
    %c0_i32 = arith.constant 0 : i32
    %c0_i32_0 = arith.constant 0 : i32
    %c0_i32_1 = arith.constant 0 : i32
    return %arg0, %c0_i32, %c0_i32_0 : i32, i32, i32
  }
  func.func @transform_6(%arg0: i32, %arg1: i32) -> (i32, i32, i32) {
    %c0_i32 = arith.constant 0 : i32
    %c0_i32_0 = arith.constant 0 : i32
    %c0_i32_1 = arith.constant 0 : i32
    return %arg0, %c0_i32, %c0_i32_0 : i32, i32, i32
  }
}

module attributes {stable_mosaic.version = 11 : i64} {
  func.func @_conv_kernel(%arg0: i32, %arg1: i32, %arg2: memref<1x36x16xbf16, #tpu.memory_space<vmem>>, %arg3: memref<8x36xbf16, #tpu.memory_space<vmem>>, %arg4: memref<8x1xf32, #tpu.memory_space<vmem>>, %arg5: memref<1xf32, #tpu.memory_space<smem>>, %arg6: memref<1x8x16xf32, #tpu.memory_space<vmem>>, %arg7: memref<1x8x1xf32, #tpu.memory_space<vmem>>, %arg8: memref<1x8x1xf32, #tpu.memory_space<vmem>>) attributes {dimension_semantics = [#tpu.dimension_semantics<parallel>, #tpu.dimension_semantics<arbitrary>], iteration_bounds = array<i64: 2, 1>, scalar_prefetch = 0 : i64, scratch_operands = 0 : i64, tpu.core_type = #tpu.core_type<tc>, window_params = [{transform_indices = @transform_0, window_bounds = array<i64: 1, 36, 16>}, {pipeline_mode = #tpu.pipeline_mode<synchronous>, transform_indices = @transform_1, window_bounds = array<i64: 8, 36>}, {pipeline_mode = #tpu.pipeline_mode<synchronous>, transform_indices = @transform_2, window_bounds = array<i64: 8, 1>}, {transform_indices = @transform_3, window_bounds = array<i64: 1>}, {transform_indices = @transform_4, window_bounds = array<i64: 1, 8, 16>}, {transform_indices = @transform_5, window_bounds = array<i64: 1, 8, 1>}, {transform_indices = @transform_6, window_bounds = array<i64: 1, 8, 1>}]} {
    %c0 = arith.constant 0 : index
    %c0_0 = arith.constant 0 : index
    %0 = vector.load %arg3[%c0, %c0_0] : memref<8x36xbf16, #tpu.memory_space<vmem>>, vector<8x36xbf16>
    %c0_1 = arith.constant 0 : index
    %c0_2 = arith.constant 0 : index
    %c0_3 = arith.constant 0 : index
    %1 = vector.load %arg2[%c0_1, %c0_2, %c0_3] : memref<1x36x16xbf16, #tpu.memory_space<vmem>>, vector<1x36x16xbf16>
    %2 = vector.shape_cast %1 : vector<1x36x16xbf16> to vector<36x16xbf16>
    %cst = arith.constant dense<0.000000e+00> : vector<8x16xf32>
    %3 = tpu.matmul %0, %2, %cst {dimension_numbers = #tpu.dot_dimension_numbers<[1], [0], [0], [1], [0, 0, 1, 1], [], []>} : vector<8x36xbf16>, vector<36x16xbf16>, vector<8x16xf32> -> vector<8x16xf32>
    %c0_4 = arith.constant 0 : index
    %c0_5 = arith.constant 0 : index
    %4 = vector.load %arg4[%c0_4, %c0_5] : memref<8x1xf32, #tpu.memory_space<vmem>>, vector<8x1xf32>
    %5 = vector.broadcast %4 : vector<8x1xf32> to vector<8x16xf32>
    %6 = arith.addf %3, %5 : vector<8x16xf32>
    %cst_6 = arith.constant dense<0.000000e+00> : vector<8xf32>
    %7 = vector.multi_reduction <add>, %6, %cst_6 [1] : vector<8x16xf32> to vector<8xf32>
    %8 = vector.shape_cast %7 : vector<8xf32> to vector<8x1xf32>
    %9 = arith.mulf %6, %6 : vector<8x16xf32>
    %cst_7 = arith.constant dense<0.000000e+00> : vector<8xf32>
    %10 = vector.multi_reduction <add>, %9, %cst_7 [1] : vector<8x16xf32> to vector<8xf32>
    %11 = vector.shape_cast %10 : vector<8xf32> to vector<8x1xf32>
    %cst_8 = arith.constant 1.600000e+01 : f32
    %12 = vector.broadcast %cst_8 : f32 to vector<8x1xf32>
    %13 = arith.divf %8, %12 : vector<8x1xf32>
    %cst_9 = arith.constant 1.600000e+01 : f32
    %14 = vector.broadcast %cst_9 : f32 to vector<8x1xf32>
    %15 = arith.divf %11, %14 : vector<8x1xf32>
    %16 = arith.mulf %13, %13 : vector<8x1xf32>
    %17 = arith.subf %15, %16 : vector<8x1xf32>
    %18 = vector.broadcast %13 : vector<8x1xf32> to vector<8x16xf32>
    %19 = arith.subf %6, %18 : vector<8x16xf32>
    %cst_10 = arith.constant 9.99999974E-6 : f32
    %20 = vector.broadcast %cst_10 : f32 to vector<8x1xf32>
    %21 = arith.addf %17, %20 : vector<8x1xf32>
    %22 = math.rsqrt %21 : vector<8x1xf32>
    %23 = vector.broadcast %22 : vector<8x1xf32> to vector<8x16xf32>
    %24 = arith.mulf %19, %23 : vector<8x16xf32>
    %c0_11 = arith.constant 0 : index
    %25 = memref.load %arg5[%c0_11] : memref<1xf32, #tpu.memory_space<smem>>
    %cst_12 = arith.constant 0.000000e+00 : f32
    %26 = vector.broadcast %cst_12 : f32 to vector<8x16xf32>
    %27 = arith.cmpf oge, %24, %26 : vector<8x16xf32>
    %28 = vector.broadcast %25 : f32 to vector<8x16xf32>
    %29 = arith.mulf %28, %24 : vector<8x16xf32>
    %30 = arith.select %27, %24, %29 : vector<8x16xi1>, vector<8x16xf32>
    %c0_13 = arith.constant 0 : index
    %c0_14 = arith.constant 0 : index
    %c0_15 = arith.constant 0 : index
    %31 = vector.load %arg6[%c0_13, %c0_14, %c0_15] : memref<1x8x16xf32, #tpu.memory_space<vmem>>, vector<1x8x16xf32>
    %32 = vector.shape_cast %31 : vector<1x8x16xf32> to vector<8x16xf32>
    %33 = vector.shape_cast %30 : vector<8x16xf32> to vector<1x8x16xf32>
    tpu.vector_store %arg6[%c0_13, %c0_14, %c0_15], %33 {strides = array<i32>} : memref<1x8x16xf32, #tpu.memory_space<vmem>>, vector<1x8x16xf32>,
    %c0_16 = arith.constant 0 : index
    %c0_17 = arith.constant 0 : index
    %c0_18 = arith.constant 0 : index
    %34 = vector.load %arg7[%c0_16, %c0_17, %c0_18] : memref<1x8x1xf32, #tpu.memory_space<vmem>>, vector<1x8x1xf32>
    %35 = vector.shape_cast %34 : vector<1x8x1xf32> to vector<8x1xf32>
    %36 = vector.shape_cast %8 : vector<8x1xf32> to vector<1x8x1xf32>
    tpu.vector_store %arg7[%c0_16, %c0_17, %c0_18], %36 {strides = array<i32>} : memref<1x8x1xf32, #tpu.memory_space<vmem>>, vector<1x8x1xf32>,
    %c0_19 = arith.constant 0 : index
    %c0_20 = arith.constant 0 : index
    %c0_21 = arith.constant 0 : index
    %37 = vector.load %arg8[%c0_19, %c0_20, %c0_21] : memref<1x8x1xf32, #tpu.memory_space<vmem>>, vector<1x8x1xf32>
    %38 = vector.shape_cast %37 : vector<1x8x1xf32> to vector<8x1xf32>
    %39 = vector.shape_cast %11 : vector<8x1xf32> to vector<1x8x1xf32>
    tpu.vector_store %arg8[%c0_19, %c0_20, %c0_21], %39 {strides = array<i32>} : memref<1x8x1xf32, #tpu.memory_space<vmem>>, vector<1x8x1xf32>,
    return
  }
  func.func @transform_0(%arg0: i32, %arg1: i32) -> (i32, i32, i32) {
    %c0_i32 = arith.constant 0 : i32
    %c0_i32_0 = arith.constant 0 : i32
    return %arg0, %c0_i32, %arg1 : i32, i32, i32
  }
  func.func @transform_1(%arg0: i32, %arg1: i32) -> (i32, i32) {
    %c0_i32 = arith.constant 0 : i32
    %c0_i32_0 = arith.constant 0 : i32
    %c0_i32_1 = arith.constant 0 : i32
    return %c0_i32, %c0_i32_0 : i32, i32
  }
  func.func @transform_2(%arg0: i32, %arg1: i32) -> (i32, i32) {
    %c0_i32 = arith.constant 0 : i32
    %c0_i32_0 = arith.constant 0 : i32
    %c0_i32_1 = arith.constant 0 : i32
    return %c0_i32, %c0_i32_0 : i32, i32
  }
  func.func @transform_3(%arg0: i32, %arg1: i32) -> i32 {
    %c0_i32 = arith.constant 0 : i32
    %c0_i32_0 = arith.constant 0 : i32
    return %c0_i32 : i32
  }
  func.func @transform_4(%arg0: i32, %arg1: i32) -> (i32, i32, i32) {
    %c0_i32 = arith.constant 0 : i32
    %c0_i32_0 = arith.constant 0 : i32
    return %arg0, %c0_i32, %arg1 : i32, i32, i32
  }
  func.func @transform_5(%arg0: i32, %arg1: i32) -> (i32, i32, i32) {
    %c0_i32 = arith.constant 0 : i32
    %c0_i32_0 = arith.constant 0 : i32
    %c0_i32_1 = arith.constant 0 : i32
    return %arg0, %c0_i32, %c0_i32_0 : i32, i32, i32
  }
  func.func @transform_6(%arg0: i32, %arg1: i32) -> (i32, i32, i32) {
    %c0_i32 = arith.constant 0 : i32
    %c0_i32_0 = arith.constant 0 : i32
    %c0_i32_1 = arith.constant 0 : i32
    return %arg0, %c0_i32, %c0_i32_0 : i32, i32, i32
  }
}

module attributes {stable_mosaic.version = 11 : i64} {
  func.func @_conv_kernel(%arg0: i32, %arg1: i32, %arg2: memref<1x72x16xbf16, #tpu.memory_space<vmem>>, %arg3: memref<16x72xbf16, #tpu.memory_space<vmem>>, %arg4: memref<16x1xf32, #tpu.memory_space<vmem>>, %arg5: memref<1xf32, #tpu.memory_space<smem>>, %arg6: memref<1x16x16xf32, #tpu.memory_space<vmem>>, %arg7: memref<1x16x1xf32, #tpu.memory_space<vmem>>, %arg8: memref<1x16x1xf32, #tpu.memory_space<vmem>>) attributes {dimension_semantics = [#tpu.dimension_semantics<parallel>, #tpu.dimension_semantics<arbitrary>], iteration_bounds = array<i64: 2, 1>, scalar_prefetch = 0 : i64, scratch_operands = 0 : i64, tpu.core_type = #tpu.core_type<tc>, window_params = [{transform_indices = @transform_0, window_bounds = array<i64: 1, 72, 16>}, {pipeline_mode = #tpu.pipeline_mode<synchronous>, transform_indices = @transform_1, window_bounds = array<i64: 16, 72>}, {pipeline_mode = #tpu.pipeline_mode<synchronous>, transform_indices = @transform_2, window_bounds = array<i64: 16, 1>}, {transform_indices = @transform_3, window_bounds = array<i64: 1>}, {transform_indices = @transform_4, window_bounds = array<i64: 1, 16, 16>}, {transform_indices = @transform_5, window_bounds = array<i64: 1, 16, 1>}, {transform_indices = @transform_6, window_bounds = array<i64: 1, 16, 1>}]} {
    %c0 = arith.constant 0 : index
    %c0_0 = arith.constant 0 : index
    %0 = vector.load %arg3[%c0, %c0_0] : memref<16x72xbf16, #tpu.memory_space<vmem>>, vector<16x72xbf16>
    %c0_1 = arith.constant 0 : index
    %c0_2 = arith.constant 0 : index
    %c0_3 = arith.constant 0 : index
    %1 = vector.load %arg2[%c0_1, %c0_2, %c0_3] : memref<1x72x16xbf16, #tpu.memory_space<vmem>>, vector<1x72x16xbf16>
    %2 = vector.shape_cast %1 : vector<1x72x16xbf16> to vector<72x16xbf16>
    %cst = arith.constant dense<0.000000e+00> : vector<16x16xf32>
    %3 = tpu.matmul %0, %2, %cst {dimension_numbers = #tpu.dot_dimension_numbers<[1], [0], [0], [1], [0, 0, 1, 1], [], []>} : vector<16x72xbf16>, vector<72x16xbf16>, vector<16x16xf32> -> vector<16x16xf32>
    %c0_4 = arith.constant 0 : index
    %c0_5 = arith.constant 0 : index
    %4 = vector.load %arg4[%c0_4, %c0_5] : memref<16x1xf32, #tpu.memory_space<vmem>>, vector<16x1xf32>
    %5 = vector.broadcast %4 : vector<16x1xf32> to vector<16x16xf32>
    %6 = arith.addf %3, %5 : vector<16x16xf32>
    %cst_6 = arith.constant dense<0.000000e+00> : vector<16xf32>
    %7 = vector.multi_reduction <add>, %6, %cst_6 [1] : vector<16x16xf32> to vector<16xf32>
    %8 = vector.shape_cast %7 : vector<16xf32> to vector<16x1xf32>
    %9 = arith.mulf %6, %6 : vector<16x16xf32>
    %cst_7 = arith.constant dense<0.000000e+00> : vector<16xf32>
    %10 = vector.multi_reduction <add>, %9, %cst_7 [1] : vector<16x16xf32> to vector<16xf32>
    %11 = vector.shape_cast %10 : vector<16xf32> to vector<16x1xf32>
    %cst_8 = arith.constant 1.600000e+01 : f32
    %12 = vector.broadcast %cst_8 : f32 to vector<16x1xf32>
    %13 = arith.divf %8, %12 : vector<16x1xf32>
    %cst_9 = arith.constant 1.600000e+01 : f32
    %14 = vector.broadcast %cst_9 : f32 to vector<16x1xf32>
    %15 = arith.divf %11, %14 : vector<16x1xf32>
    %16 = arith.mulf %13, %13 : vector<16x1xf32>
    %17 = arith.subf %15, %16 : vector<16x1xf32>
    %18 = vector.broadcast %13 : vector<16x1xf32> to vector<16x16xf32>
    %19 = arith.subf %6, %18 : vector<16x16xf32>
    %cst_10 = arith.constant 9.99999974E-6 : f32
    %20 = vector.broadcast %cst_10 : f32 to vector<16x1xf32>
    %21 = arith.addf %17, %20 : vector<16x1xf32>
    %22 = math.rsqrt %21 : vector<16x1xf32>
    %23 = vector.broadcast %22 : vector<16x1xf32> to vector<16x16xf32>
    %24 = arith.mulf %19, %23 : vector<16x16xf32>
    %c0_11 = arith.constant 0 : index
    %25 = memref.load %arg5[%c0_11] : memref<1xf32, #tpu.memory_space<smem>>
    %cst_12 = arith.constant 0.000000e+00 : f32
    %26 = vector.broadcast %cst_12 : f32 to vector<16x16xf32>
    %27 = arith.cmpf oge, %24, %26 : vector<16x16xf32>
    %28 = vector.broadcast %25 : f32 to vector<16x16xf32>
    %29 = arith.mulf %28, %24 : vector<16x16xf32>
    %30 = arith.select %27, %24, %29 : vector<16x16xi1>, vector<16x16xf32>
    %c0_13 = arith.constant 0 : index
    %c0_14 = arith.constant 0 : index
    %c0_15 = arith.constant 0 : index
    %31 = vector.load %arg6[%c0_13, %c0_14, %c0_15] : memref<1x16x16xf32, #tpu.memory_space<vmem>>, vector<1x16x16xf32>
    %32 = vector.shape_cast %31 : vector<1x16x16xf32> to vector<16x16xf32>
    %33 = vector.shape_cast %30 : vector<16x16xf32> to vector<1x16x16xf32>
    tpu.vector_store %arg6[%c0_13, %c0_14, %c0_15], %33 {strides = array<i32>} : memref<1x16x16xf32, #tpu.memory_space<vmem>>, vector<1x16x16xf32>,
    %c0_16 = arith.constant 0 : index
    %c0_17 = arith.constant 0 : index
    %c0_18 = arith.constant 0 : index
    %34 = vector.load %arg7[%c0_16, %c0_17, %c0_18] : memref<1x16x1xf32, #tpu.memory_space<vmem>>, vector<1x16x1xf32>
    %35 = vector.shape_cast %34 : vector<1x16x1xf32> to vector<16x1xf32>
    %36 = vector.shape_cast %8 : vector<16x1xf32> to vector<1x16x1xf32>
    tpu.vector_store %arg7[%c0_16, %c0_17, %c0_18], %36 {strides = array<i32>} : memref<1x16x1xf32, #tpu.memory_space<vmem>>, vector<1x16x1xf32>,
    %c0_19 = arith.constant 0 : index
    %c0_20 = arith.constant 0 : index
    %c0_21 = arith.constant 0 : index
    %37 = vector.load %arg8[%c0_19, %c0_20, %c0_21] : memref<1x16x1xf32, #tpu.memory_space<vmem>>, vector<1x16x1xf32>
    %38 = vector.shape_cast %37 : vector<1x16x1xf32> to vector<16x1xf32>
    %39 = vector.shape_cast %11 : vector<16x1xf32> to vector<1x16x1xf32>
    tpu.vector_store %arg8[%c0_19, %c0_20, %c0_21], %39 {strides = array<i32>} : memref<1x16x1xf32, #tpu.memory_space<vmem>>, vector<1x16x1xf32>,
    return
  }
  func.func @transform_0(%arg0: i32, %arg1: i32) -> (i32, i32, i32) {
    %c0_i32 = arith.constant 0 : i32
    %c0_i32_0 = arith.constant 0 : i32
    return %arg0, %c0_i32, %arg1 : i32, i32, i32
  }
  func.func @transform_1(%arg0: i32, %arg1: i32) -> (i32, i32) {
    %c0_i32 = arith.constant 0 : i32
    %c0_i32_0 = arith.constant 0 : i32
    %c0_i32_1 = arith.constant 0 : i32
    return %c0_i32, %c0_i32_0 : i32, i32
  }
  func.func @transform_2(%arg0: i32, %arg1: i32) -> (i32, i32) {
    %c0_i32 = arith.constant 0 : i32
    %c0_i32_0 = arith.constant 0 : i32
    %c0_i32_1 = arith.constant 0 : i32
    return %c0_i32, %c0_i32_0 : i32, i32
  }
  func.func @transform_3(%arg0: i32, %arg1: i32) -> i32 {
    %c0_i32 = arith.constant 0 : i32
    %c0_i32_0 = arith.constant 0 : i32
    return %c0_i32 : i32
  }
  func.func @transform_4(%arg0: i32, %arg1: i32) -> (i32, i32, i32) {
    %c0_i32 = arith.constant 0 : i32
    %c0_i32_0 = arith.constant 0 : i32
    return %arg0, %c0_i32, %arg1 : i32, i32, i32
  }
  func.func @transform_5(%arg0: i32, %arg1: i32) -> (i32, i32, i32) {
    %c0_i32 = arith.constant 0 : i32
    %c0_i32_0 = arith.constant 0 : i32
    %c0_i32_1 = arith.constant 0 : i32
    return %arg0, %c0_i32, %c0_i32_0 : i32, i32, i32
  }
  func.func @transform_6(%arg0: i32, %arg1: i32) -> (i32, i32, i32) {
    %c0_i32 = arith.constant 0 : i32
    %c0_i32_0 = arith.constant 0 : i32
    %c0_i32_1 = arith.constant 0 : i32
    return %arg0, %c0_i32, %c0_i32_0 : i32, i32, i32
  }
}

module attributes {stable_mosaic.version = 11 : i64} {
  func.func @_conv_kernel(%arg0: i32, %arg1: i32, %arg2: memref<1x96x16xbf16, #tpu.memory_space<vmem>>, %arg3: memref<16x96xbf16, #tpu.memory_space<vmem>>, %arg4: memref<16x1xf32, #tpu.memory_space<vmem>>, %arg5: memref<1xf32, #tpu.memory_space<smem>>, %arg6: memref<1x16x16xf32, #tpu.memory_space<vmem>>, %arg7: memref<1x16x1xf32, #tpu.memory_space<vmem>>, %arg8: memref<1x16x1xf32, #tpu.memory_space<vmem>>) attributes {dimension_semantics = [#tpu.dimension_semantics<parallel>, #tpu.dimension_semantics<arbitrary>], iteration_bounds = array<i64: 2, 1>, scalar_prefetch = 0 : i64, scratch_operands = 0 : i64, tpu.core_type = #tpu.core_type<tc>, window_params = [{transform_indices = @transform_0, window_bounds = array<i64: 1, 96, 16>}, {pipeline_mode = #tpu.pipeline_mode<synchronous>, transform_indices = @transform_1, window_bounds = array<i64: 16, 96>}, {pipeline_mode = #tpu.pipeline_mode<synchronous>, transform_indices = @transform_2, window_bounds = array<i64: 16, 1>}, {transform_indices = @transform_3, window_bounds = array<i64: 1>}, {transform_indices = @transform_4, window_bounds = array<i64: 1, 16, 16>}, {transform_indices = @transform_5, window_bounds = array<i64: 1, 16, 1>}, {transform_indices = @transform_6, window_bounds = array<i64: 1, 16, 1>}]} {
    %c0 = arith.constant 0 : index
    %c0_0 = arith.constant 0 : index
    %0 = vector.load %arg3[%c0, %c0_0] : memref<16x96xbf16, #tpu.memory_space<vmem>>, vector<16x96xbf16>
    %c0_1 = arith.constant 0 : index
    %c0_2 = arith.constant 0 : index
    %c0_3 = arith.constant 0 : index
    %1 = vector.load %arg2[%c0_1, %c0_2, %c0_3] : memref<1x96x16xbf16, #tpu.memory_space<vmem>>, vector<1x96x16xbf16>
    %2 = vector.shape_cast %1 : vector<1x96x16xbf16> to vector<96x16xbf16>
    %cst = arith.constant dense<0.000000e+00> : vector<16x16xf32>
    %3 = tpu.matmul %0, %2, %cst {dimension_numbers = #tpu.dot_dimension_numbers<[1], [0], [0], [1], [0, 0, 1, 1], [], []>} : vector<16x96xbf16>, vector<96x16xbf16>, vector<16x16xf32> -> vector<16x16xf32>
    %c0_4 = arith.constant 0 : index
    %c0_5 = arith.constant 0 : index
    %4 = vector.load %arg4[%c0_4, %c0_5] : memref<16x1xf32, #tpu.memory_space<vmem>>, vector<16x1xf32>
    %5 = vector.broadcast %4 : vector<16x1xf32> to vector<16x16xf32>
    %6 = arith.addf %3, %5 : vector<16x16xf32>
    %cst_6 = arith.constant dense<0.000000e+00> : vector<16xf32>
    %7 = vector.multi_reduction <add>, %6, %cst_6 [1] : vector<16x16xf32> to vector<16xf32>
    %8 = vector.shape_cast %7 : vector<16xf32> to vector<16x1xf32>
    %9 = arith.mulf %6, %6 : vector<16x16xf32>
    %cst_7 = arith.constant dense<0.000000e+00> : vector<16xf32>
    %10 = vector.multi_reduction <add>, %9, %cst_7 [1] : vector<16x16xf32> to vector<16xf32>
    %11 = vector.shape_cast %10 : vector<16xf32> to vector<16x1xf32>
    %12 = tpu.iota {dimensions = array<i32: 0>} : vector<16x16xi32>
    %c4_i32 = arith.constant 4 : i32
    %c0_i32 = arith.constant 0 : i32
    %13 = arith.cmpi eq, %c4_i32, %c0_i32 : i32
    %c1_i32 = arith.constant 1 : i32
    %14 = arith.select %13, %c1_i32, %c4_i32 : i32
    %15 = vector.broadcast %14 : i32 to vector<16x16xi32>
    %16 = arith.remsi %12, %15 : vector<16x16xi32>
    %c0_i32_8 = arith.constant 0 : i32
    %17 = vector.broadcast %c0_i32_8 : i32 to vector<16x16xi32>
    %18 = arith.cmpi ne, %16, %17 : vector<16x16xi32>
    %c0_i32_9 = arith.constant 0 : i32
    %19 = vector.broadcast %c0_i32_9 : i32 to vector<16x16xi32>
    %20 = arith.cmpi slt, %16, %19 : vector<16x16xi32>
    %c0_i32_10 = arith.constant 0 : i32
    %21 = arith.cmpi slt, %14, %c0_i32_10 : i32
    %22 = vector.broadcast %21 : i1 to vector<16x16xi1>
    %23 = vector.broadcast %22 : vector<16x16xi1> to vector<16x16xi1>
    %24 = arith.xori %20, %23 : vector<16x16xi1>
    %25 = arith.andi %24, %18 : vector<16x16xi1>
    %26 = vector.broadcast %14 : i32 to vector<16x16xi32>
    %27 = arith.addi %16, %26 : vector<16x16xi32>
    %28 = arith.select %25, %27, %16 : vector<16x16xi1>, vector<16x16xi32>
    %29 = tpu.iota {dimensions = array<i32: 1>} : vector<16x16xi32>
    %c4_i32_11 = arith.constant 4 : i32
    %c0_i32_12 = arith.constant 0 : i32
    %30 = arith.cmpi eq, %c4_i32_11, %c0_i32_12 : i32
    %c1_i32_13 = arith.constant 1 : i32
    %31 = arith.select %30, %c1_i32_13, %c4_i32_11 : i32
    %32 = vector.broadcast %31 : i32 to vector<16x16xi32>
    %33 = arith.remsi %29, %32 : vector<16x16xi32>
    %c0_i32_14 = arith.constant 0 : i32
    %34 = vector.broadcast %c0_i32_14 : i32 to vector<16x16xi32>
    %35 = arith.cmpi ne, %33, %34 : vector<16x16xi32>
    %c0_i32_15 = arith.constant 0 : i32
    %36 = vector.broadcast %c0_i32_15 : i32 to vector<16x16xi32>
    %37 = arith.cmpi slt, %33, %36 : vector<16x16xi32>
    %c0_i32_16 = arith.constant 0 : i32
    %38 = arith.cmpi slt, %31, %c0_i32_16 : i32
    %39 = vector.broadcast %38 : i1 to vector<16x16xi1>
    %40 = vector.broadcast %39 : vector<16x16xi1> to vector<16x16xi1>
    %41 = arith.xori %37, %40 : vector<16x16xi1>
    %42 = arith.andi %41, %35 : vector<16x16xi1>
    %43 = vector.broadcast %31 : i32 to vector<16x16xi32>
    %44 = arith.addi %33, %43 : vector<16x16xi32>
    %45 = arith.select %42, %44, %33 : vector<16x16xi1>, vector<16x16xi32>
    %46 = arith.cmpi eq, %28, %45 : vector<16x16xi32>
    %47 = arith.extui %46 : vector<16x16xi1> to vector<16x16xi32>
    %48 = arith.sitofp %47 : vector<16x16xi32> to vector<16x16xf32>
    %cst_17 = arith.constant dense<0.000000e+00> : vector<16x1xf32>
    %49 = tpu.matmul %48, %8, %cst_17 {dimension_numbers = #tpu.dot_dimension_numbers<[1], [0], [0], [1], [0, 0, 1, 1], [], []>} : vector<16x16xf32>, vector<16x1xf32>, vector<16x1xf32> -> vector<16x1xf32>
    %cst_18 = arith.constant dense<0.000000e+00> : vector<16x1xf32>
    %50 = tpu.matmul %48, %11, %cst_18 {dimension_numbers = #tpu.dot_dimension_numbers<[1], [0], [0], [1], [0, 0, 1, 1], [], []>} : vector<16x16xf32>, vector<16x1xf32>, vector<16x1xf32> -> vector<16x1xf32>
    %cst_19 = arith.constant 6.400000e+01 : f32
    %51 = vector.broadcast %cst_19 : f32 to vector<16x1xf32>
    %52 = arith.divf %49, %51 : vector<16x1xf32>
    %cst_20 = arith.constant 6.400000e+01 : f32
    %53 = vector.broadcast %cst_20 : f32 to vector<16x1xf32>
    %54 = arith.divf %50, %53 : vector<16x1xf32>
    %55 = arith.mulf %52, %52 : vector<16x1xf32>
    %56 = arith.subf %54, %55 : vector<16x1xf32>
    %57 = vector.broadcast %52 : vector<16x1xf32> to vector<16x16xf32>
    %58 = arith.subf %6, %57 : vector<16x16xf32>
    %cst_21 = arith.constant 9.99999974E-6 : f32
    %59 = vector.broadcast %cst_21 : f32 to vector<16x1xf32>
    %60 = arith.addf %56, %59 : vector<16x1xf32>
    %61 = math.rsqrt %60 : vector<16x1xf32>
    %62 = vector.broadcast %61 : vector<16x1xf32> to vector<16x16xf32>
    %63 = arith.mulf %58, %62 : vector<16x16xf32>
    %c0_22 = arith.constant 0 : index
    %64 = memref.load %arg5[%c0_22] : memref<1xf32, #tpu.memory_space<smem>>
    %cst_23 = arith.constant 0.000000e+00 : f32
    %65 = vector.broadcast %cst_23 : f32 to vector<16x16xf32>
    %66 = arith.cmpf oge, %63, %65 : vector<16x16xf32>
    %67 = vector.broadcast %64 : f32 to vector<16x16xf32>
    %68 = arith.mulf %67, %63 : vector<16x16xf32>
    %69 = arith.select %66, %63, %68 : vector<16x16xi1>, vector<16x16xf32>
    %c0_24 = arith.constant 0 : index
    %c0_25 = arith.constant 0 : index
    %c0_26 = arith.constant 0 : index
    %70 = vector.load %arg6[%c0_24, %c0_25, %c0_26] : memref<1x16x16xf32, #tpu.memory_space<vmem>>, vector<1x16x16xf32>
    %71 = vector.shape_cast %70 : vector<1x16x16xf32> to vector<16x16xf32>
    %72 = vector.shape_cast %69 : vector<16x16xf32> to vector<1x16x16xf32>
    tpu.vector_store %arg6[%c0_24, %c0_25, %c0_26], %72 {strides = array<i32>} : memref<1x16x16xf32, #tpu.memory_space<vmem>>, vector<1x16x16xf32>,
    %c0_27 = arith.constant 0 : index
    %c0_28 = arith.constant 0 : index
    %c0_29 = arith.constant 0 : index
    %73 = vector.load %arg7[%c0_27, %c0_28, %c0_29] : memref<1x16x1xf32, #tpu.memory_space<vmem>>, vector<1x16x1xf32>
    %74 = vector.shape_cast %73 : vector<1x16x1xf32> to vector<16x1xf32>
    %75 = vector.shape_cast %8 : vector<16x1xf32> to vector<1x16x1xf32>
    tpu.vector_store %arg7[%c0_27, %c0_28, %c0_29], %75 {strides = array<i32>} : memref<1x16x1xf32, #tpu.memory_space<vmem>>, vector<1x16x1xf32>,
    %c0_30 = arith.constant 0 : index
    %c0_31 = arith.constant 0 : index
    %c0_32 = arith.constant 0 : index
    %76 = vector.load %arg8[%c0_30, %c0_31, %c0_32] : memref<1x16x1xf32, #tpu.memory_space<vmem>>, vector<1x16x1xf32>
    %77 = vector.shape_cast %76 : vector<1x16x1xf32> to vector<16x1xf32>
    %78 = vector.shape_cast %11 : vector<16x1xf32> to vector<1x16x1xf32>
    tpu.vector_store %arg8[%c0_30, %c0_31, %c0_32], %78 {strides = array<i32>} : memref<1x16x1xf32, #tpu.memory_space<vmem>>, vector<1x16x1xf32>,
    return
  }
  func.func @transform_0(%arg0: i32, %arg1: i32) -> (i32, i32, i32) {
    %c0_i32 = arith.constant 0 : i32
    %c0_i32_0 = arith.constant 0 : i32
    return %arg0, %c0_i32, %arg1 : i32, i32, i32
  }
  func.func @transform_1(%arg0: i32, %arg1: i32) -> (i32, i32) {
    %c0_i32 = arith.constant 0 : i32
    %c0_i32_0 = arith.constant 0 : i32
    %c0_i32_1 = arith.constant 0 : i32
    return %c0_i32, %c0_i32_0 : i32, i32
  }
  func.func @transform_2(%arg0: i32, %arg1: i32) -> (i32, i32) {
    %c0_i32 = arith.constant 0 : i32
    %c0_i32_0 = arith.constant 0 : i32
    %c0_i32_1 = arith.constant 0 : i32
    return %c0_i32, %c0_i32_0 : i32, i32
  }
  func.func @transform_3(%arg0: i32, %arg1: i32) -> i32 {
    %c0_i32 = arith.constant 0 : i32
    %c0_i32_0 = arith.constant 0 : i32
    return %c0_i32 : i32
  }
  func.func @transform_4(%arg0: i32, %arg1: i32) -> (i32, i32, i32) {
    %c0_i32 = arith.constant 0 : i32
    %c0_i32_0 = arith.constant 0 : i32
    return %arg0, %c0_i32, %arg1 : i32, i32, i32
  }
  func.func @transform_5(%arg0: i32, %arg1: i32) -> (i32, i32, i32) {
    %c0_i32 = arith.constant 0 : i32
    %c0_i32_0 = arith.constant 0 : i32
    %c0_i32_1 = arith.constant 0 : i32
    return %arg0, %c0_i32, %c0_i32_0 : i32, i32, i32
  }
  func.func @transform_6(%arg0: i32, %arg1: i32) -> (i32, i32, i32) {
    %c0_i32 = arith.constant 0 : i32
    %c0_i32_0 = arith.constant 0 : i32
    %c0_i32_1 = arith.constant 0 : i32
    return %arg0, %c0_i32, %c0_i32_0 : i32, i32, i32
  }
}

module attributes {stable_mosaic.version = 11 : i64} {
  func.func @_conv_kernel(%arg0: i32, %arg1: i32, %arg2: memref<1x32x64xbf16, #tpu.memory_space<vmem>>, %arg3: memref<4x32xbf16, #tpu.memory_space<vmem>>, %arg4: memref<4x1xf32, #tpu.memory_space<vmem>>, %arg5: memref<1xf32, #tpu.memory_space<smem>>, %arg6: memref<1x4x64xf32, #tpu.memory_space<vmem>>, %arg7: memref<1x4x1xf32, #tpu.memory_space<vmem>>, %arg8: memref<1x4x1xf32, #tpu.memory_space<vmem>>) attributes {dimension_semantics = [#tpu.dimension_semantics<parallel>, #tpu.dimension_semantics<arbitrary>], iteration_bounds = array<i64: 2, 1>, scalar_prefetch = 0 : i64, scratch_operands = 0 : i64, tpu.core_type = #tpu.core_type<tc>, window_params = [{transform_indices = @transform_0, window_bounds = array<i64: 1, 32, 64>}, {pipeline_mode = #tpu.pipeline_mode<synchronous>, transform_indices = @transform_1, window_bounds = array<i64: 4, 32>}, {pipeline_mode = #tpu.pipeline_mode<synchronous>, transform_indices = @transform_2, window_bounds = array<i64: 4, 1>}, {transform_indices = @transform_3, window_bounds = array<i64: 1>}, {transform_indices = @transform_4, window_bounds = array<i64: 1, 4, 64>}, {transform_indices = @transform_5, window_bounds = array<i64: 1, 4, 1>}, {transform_indices = @transform_6, window_bounds = array<i64: 1, 4, 1>}]} {
    %c0 = arith.constant 0 : index
    %c0_0 = arith.constant 0 : index
    %0 = vector.load %arg3[%c0, %c0_0] : memref<4x32xbf16, #tpu.memory_space<vmem>>, vector<4x32xbf16>
    %c0_1 = arith.constant 0 : index
    %c0_2 = arith.constant 0 : index
    %c0_3 = arith.constant 0 : index
    %1 = vector.load %arg2[%c0_1, %c0_2, %c0_3] : memref<1x32x64xbf16, #tpu.memory_space<vmem>>, vector<1x32x64xbf16>
    %2 = vector.shape_cast %1 : vector<1x32x64xbf16> to vector<32x64xbf16>
    %cst = arith.constant dense<0.000000e+00> : vector<4x64xf32>
    %3 = tpu.matmul %0, %2, %cst {dimension_numbers = #tpu.dot_dimension_numbers<[1], [0], [0], [1], [0, 0, 1, 1], [], []>} : vector<4x32xbf16>, vector<32x64xbf16>, vector<4x64xf32> -> vector<4x64xf32>
    %c0_4 = arith.constant 0 : index
    %c0_5 = arith.constant 0 : index
    %4 = vector.load %arg4[%c0_4, %c0_5] : memref<4x1xf32, #tpu.memory_space<vmem>>, vector<4x1xf32>
    %5 = vector.broadcast %4 : vector<4x1xf32> to vector<4x64xf32>
    %6 = arith.addf %3, %5 : vector<4x64xf32>
    %c0_6 = arith.constant 0 : index
    %c0_7 = arith.constant 0 : index
    %c0_8 = arith.constant 0 : index
    %7 = vector.load %arg6[%c0_6, %c0_7, %c0_8] : memref<1x4x64xf32, #tpu.memory_space<vmem>>, vector<1x4x64xf32>
    %8 = vector.shape_cast %7 : vector<1x4x64xf32> to vector<4x64xf32>
    %9 = vector.shape_cast %6 : vector<4x64xf32> to vector<1x4x64xf32>
    tpu.vector_store %arg6[%c0_6, %c0_7, %c0_8], %9 {strides = array<i32>} : memref<1x4x64xf32, #tpu.memory_space<vmem>>, vector<1x4x64xf32>,
    return
  }
  func.func @transform_0(%arg0: i32, %arg1: i32) -> (i32, i32, i32) {
    %c0_i32 = arith.constant 0 : i32
    %c0_i32_0 = arith.constant 0 : i32
    return %arg0, %c0_i32, %arg1 : i32, i32, i32
  }
  func.func @transform_1(%arg0: i32, %arg1: i32) -> (i32, i32) {
    %c0_i32 = arith.constant 0 : i32
    %c0_i32_0 = arith.constant 0 : i32
    %c0_i32_1 = arith.constant 0 : i32
    return %c0_i32, %c0_i32_0 : i32, i32
  }
  func.func @transform_2(%arg0: i32, %arg1: i32) -> (i32, i32) {
    %c0_i32 = arith.constant 0 : i32
    %c0_i32_0 = arith.constant 0 : i32
    %c0_i32_1 = arith.constant 0 : i32
    return %c0_i32, %c0_i32_0 : i32, i32
  }
  func.func @transform_3(%arg0: i32, %arg1: i32) -> i32 {
    %c0_i32 = arith.constant 0 : i32
    %c0_i32_0 = arith.constant 0 : i32
    return %c0_i32 : i32
  }
  func.func @transform_4(%arg0: i32, %arg1: i32) -> (i32, i32, i32) {
    %c0_i32 = arith.constant 0 : i32
    %c0_i32_0 = arith.constant 0 : i32
    return %arg0, %c0_i32, %arg1 : i32, i32, i32
  }
  func.func @transform_5(%arg0: i32, %arg1: i32) -> (i32, i32, i32) {
    %c0_i32 = arith.constant 0 : i32
    %c0_i32_0 = arith.constant 0 : i32
    %c0_i32_1 = arith.constant 0 : i32
    return %arg0, %c0_i32, %c0_i32_0 : i32, i32, i32
  }
  func.func @transform_6(%arg0: i32, %arg1: i32) -> (i32, i32, i32) {
    %c0_i32 = arith.constant 0 : i32
    %c0_i32_0 = arith.constant 0 : i32
    %c0_i32_1 = arith.constant 0 : i32
    return %arg0, %c0_i32, %c0_i32_0 : i32, i32, i32
  }
}

</mosaic_0001>

<bundles_post_ra>
// kernel: unet_forward.5
= control target key start
LH: loop header
LB: loop body
LE: loop exit
PB: predicated region body
PF: predicated region fallthrough
CT: control target
= control target key end

     0   :  { %s955_s0 = inlined_call_operand.vmem [shape: bf16[2,9,64], index: 0, kind: input, shape index: {}]   ;;  %s956_s1 = inlined_call_operand.vmem [shape: bf16[4,9], index: 1, kind: input, shape index: {}]   ;;  %s957_s2 = inlined_call_operand.vmem [shape: f32[4,1], index: 2, kind: input, shape index: {}]   ;;  %s958_s3 = inlined_call_operand.<no memory space> [shape: f32[1], index: 3, kind: input, shape index: {}]   ;;  %s959_s4 = inlined_call_operand.vmem [shape: f32[2,4,64], index: 4, kind: output, shape index: {0}]   ;;  %s960_s5 = inlined_call_operand.hbm [shape: f32[2,4,1], index: 5, kind: output, shape index: {1}]   ;;  %s961_s6 = inlined_call_operand.hbm [shape: f32[2,4,1], index: 6, kind: output, shape index: {2}]  }
   0x1   :  { %12 = sst [smem:[#allocation2]] %s958_s3 }
   0x2   :  { %13 = vsyncpa [#allocation4], 0 }
   0x3   :  { %15 = vsyncpa [#allocation4 + $0x1], 0 }
   0x4   :  { %16 = vsyncpa [#allocation6], 0 }
   0x5   :  { %18 = vsyncpa [#allocation6 + $0x1], 0  ;;  %s809_s23 = smov 0   ;;  %s811_s24 = smov 0  }
   0x6   :  { %s813_s25 = smov 0   ;;  %s815_s26 = smov 0  }
   0x7   :  { %s817_s27 = smov 0   ;;  %s819_s28 = smov 0  }
   0x8 LB: > { %s565_s3 = sadd.s32 4294967295, %s766_s28   ;;  %s566_s29 = sadd.s32 4294967294, %s766_s28   ;;  %s766_s28 = sphi %s819_s28, %s24_s28   ;;  %s762_s27 = sphi %s817_s27, %s968_s27   ;;  %s758_s26 = sphi %s815_s26, %s967_s26   ;;  %s754_s25 = sphi %s813_s25, %s966_s25   ;;  %s750_s24 = sphi %s811_s24, %s965_s24   ;;  %s746_s23 = sphi %s809_s23, %s964_s23  }
   0x9   : > { %s36_s30 = sadd.s32 1, %s762_s27  ;;  %s162_s7 = sadd.s32 1, %s754_s25 }
   0xa   : > { %p38_p0 = scmp.ge.s32.totalorder %s36_s30, 2  ;;  %p172_p1 = scmp.ne.s32.totalorder %s754_s25, %s750_s24 }
   0xb   : > { %p173_p2 = scmp.eq.s32.totalorder %s565_s3, 1  ;;  %p178_p3 = scmp.ne.s32.totalorder %s750_s24, %s746_s23 }
   0xc   : > { %s970_s30 = smov (%p38_p0, %s36_s30), 0  ;;  %p179_p5 = scmp.eq.s32.totalorder %s566_s29, 1 }
   0xd   : > { %p849_p4 = por %p173_p2, %p172_p1  ;;  %s159_s9 = ssub.s32 %s762_s27, %s970_s30 }
   0xe   : > { %p569_p6 = scmp.ge.s32.totalorder %s766_s28, 1  ;;  %p160_p7 = scmp.eq.s32.totalorder %s159_s9, 0 }
   0xf   : > { %p856_p8 = por %p179_p5, %p178_p3  ;;  %p243_p9 = scmp.lt.s32.totalorder %s766_s28, 3 }
  0x10   : > { %s862_s11 = scalar_select %p160_p7, %s754_s25, %s162_s7  }
  0x11   : > { %p244_p10 = pnand %p569_p6, %p243_p9 }
  0x12   : > { %p288_p11 = scmp.lt.s32.totalorder (!%p244_p10), %s758_s26, 1  ;;  %s886_s21 = sand.u32 (!%p244_p10), 1, %s750_s24  }
  0x13   : > { %247 = sbr.rel (%p244_p10) target bundleno = 324 (0x144), region = 36  ;;  %s582_s22 = sshll.u32 (!%p244_p10), %s758_s26, 2 }
  0x14   : > { %s570_s3 = sshll.u32 (!%p244_p10), %s886_s21, 2  ;;  %s409_s9 = scalar_lea.hbm (!%p244_p10), %s960_s5, %s582_s22 }
  0x15   : > { %s280_s16 = scalar_lea.vmem (!%p244_p10), [#allocation3], %s570_s3  ;;  %s287_s19 = scalar_lea.vmem (!%p244_p10), [#allocation5], %s570_s3 }
  0x16   : > { %s411_s17 = sshll.u32 (!%p244_p10), %s280_s16, 4  ;;  %s676_s12 = scalar_lea.hbm (!%p244_p10), %s960_s5, 8  ;;  %s412_s17 = int_to_ptr.vmem [resolvable:$true] %s411_s17 }
  0x18   : > { %vm322_vm0 = vcmask 1043456   ;;  %v307_v0 = vld [vmem:[%s957_s2] sm:$0xf]  ;;  %s869_s14 = scalar_select %p288_p11, %s758_s26, 1  ;;  %v768_v1 = vmov 0   ;;  %vm323_vm1 = vcmask 1044480  }
  0x19   : > { %651 = vset.pattern.permute.xlu0 %v768_v1  ;;  %v769_v2 = vmov 65535   ;;  %v304_v9 = vld [vmem:[%s956_s1] sm:$0x3]  ;;  %vm318_vm2 = vcmask 72704   ;;  %vm342_vm3 = vcmask 519168   ;;  %v770_v17 = vmov 64.0  }
  0x1a   : > { %v324_v3 = vsel %vm322_vm0, 4294967295, %v769_v2  ;;  %310 = vperm.xlu0 %651, %v307_v0   ;;  %s586_s15 = sshll.u32 %s869_s14, 3  ;;  %652 = vrcp.f32 %v770_v17  ;;  %vm380_vm5 = vcmask 3072   ;;  %s425_s26 = sshll.u32 %s287_s19, 4  ;;  %s897_s26 = int_to_ptr.vmem [resolvable:$true] %s425_s26 }
  0x1b   : > { %s295_s18 = scalar_lea.vmem %s955_s0, %s586_s15  ;;  %v325_v6 = vsel %vm323_vm1, %v324_v3, 0  ;;  %s423_s15 = scalar_lea.hbm %s961_s6, %s582_s22 }
  0x1c   : > { %v577_v4 = vld [vmem:[%s295_s18] sm:$0xf]  ;;  %v587_v5 = vld [vmem:[%s295_s18] sm:$0x10]  ;;  %s413_s18 = sshll.u32 %s409_s9, 4  ;;  %s427_s20 = sshll.u32 %s423_s15, 4  ;;  %s414_s18 = int_to_ptr.hbm [resolvable:$true] %s413_s18  ;;  %s899_s20 = int_to_ptr.hbm [resolvable:$true] %s427_s20 }
  0x1d   : > { %v578_v7 = vor.u32 %v587_v5, %v577_v4  ;;  %s391_s22 = scalar_lea.sflag [#allocation4], %s886_s21  ;;  %s670_s29 = sshra.s32 %s414_s18, 4  ;;  %s671_s29 = int_to_ptr.hbm [resolvable:$true] %s670_s29 }
  0x1e   : > { %s672_s7 = scalar_lea.hbm %s671_s29, 4  ;;  %p677_p1 = scmp.lt.s32.totalorder %s671_s29, %s960_s5 }
  0x1f   : > { %v327_v8 = vand.u32 %v578_v7, %v325_v6  ;;  %p673_p12 = scmp.ne.s32.totalorder %s671_s29, %s672_s7  ;;  %p678_p2 = scmp.lt.s32.totalorder %s676_s12, %s672_s7 }
  0x20   : > { %v653_v18 = vpop.eup %652 }
  0x21   : > { %336 = vmatpush.bf16.msra.mxu0 %v327_v8  ;;  %v351_v19 = vmul.f32 64.0, %v653_v18  ;;  %vm355_vm4 = vweird.f32 %v653_v18  ;;  %p674_p13 = pnand %p673_p12, %p849_p4  ;;  %p679_p3 = por %p678_p2, %p677_p1 }
  0x23   : > { %v352_v20 = vsub.f32 1.0, %v351_v19  ;;  %p675_p0 = pneg %p674_p13 }
  0x24   : > { %579 = vmatmul.msk.bf16.vlgmr.msra.gmra.mxu0 %vm318_vm2, %v304_v9 }
  0x25   : > { %v353_v21 = vmul.f32 %v653_v18, %v352_v20  ;;  %p680_p5 = pnand %p679_p3, %p675_p0 }
  0x27   : > { %v354_v22 = vadd.f32 %v653_v18, %v353_v21 }
  0x29   : > { %v356_v23 = vsel %vm355_vm4, %v653_v18, %v354_v22 }
  0x8c   : > { %v311_v10 = vpop.permute.xlu0 %310 }
  0xa1   : > { %v338_v11 = vpop.f32.mrf.mxu0 }
  0xa2   : > { %v878_v12 = vadd.f32 %v338_v11, %v311_v10 }
  0xa4   : > { %v343_v13 = vsel %vm342_vm3, %v878_v12, 0.0  ;;  %v346_v14 = vmul.f32 %v878_v12, %v878_v12 }
  0xa5   : > { %344 = vadd.xlane.f32.xlu0 %v343_v13 }
  0xa6   : > { %v347_v15 = vsel %vm342_vm3, %v346_v14, 0.0 }
  0xa7   : > { %348 = vadd.xlane.f32.xlu1 %v347_v15 }
  0xa9   : > { %v340_v16 = vpop.f32.mrf.mxu0 }
 0x118   : > { %v345_v24 = vpop.xlane.xlu0 %344 }
 0x119   : > { %v357_v25 = vmul.f32 %v356_v23, %v345_v24  ;;  %381 = vst.msk [vmem:[%s280_s16] sm:$0xf] %vm380_vm5, %v345_v24 }
 0x11a   : > { %v349_v26 = vpop.xlane.xlu1 %348 }
 0x11b   : > { %683 = shalt.err (!%p680_p5)
}
 0x11c   : > { %588 = dma.vmem_to_hbm [thread:$0]  (%p849_p4), %s412_s17, 64, %s414_s18, %s391_s22   ;;  %v359_v27 = vmul.f32 %v357_v25, %v357_v25  ;;  %v358_v28 = vmul.f32 %v356_v23, %v349_v26  ;;  %382 = vst.msk [vmem:[%s287_s19] sm:$0xf] %vm380_vm5, %v349_v26 }
 0x11d   : > { %s396_s16 = scalar_lea.sflag [#allocation6], %s886_s21  ;;  %s698_s3 = sshra.s32 %s899_s20, 4  ;;  %s699_s3 = int_to_ptr.hbm [resolvable:$true] %s698_s3 }
 0x11e   : > { %s700_s9 = scalar_lea.hbm %s699_s3, 4  ;;  %s704_s12 = scalar_lea.hbm %s961_s6, 8 }
 0x11f   : > { %p701_p6 = scmp.ne.s32.totalorder %s699_s3, %s700_s9  ;;  %p705_p10 = scmp.lt.s32.totalorder %s699_s3, %s961_s6 }
 0x120   : > { %p706_p11 = scmp.lt.s32.totalorder %s704_s12, %s700_s9 }
 0x121   : > { %p702_p7 = pnand %p701_p6, %p849_p4 }
 0x122   : > { %p707_p12 = por %p706_p11, %p705_p10 }
 0x123   : > { %p703_p9 = pneg %p702_p7 }
 0x125   : > { %p708_p13 = pnand %p707_p12, %p703_p9 }
 0x127   : > { %711 = shalt.err (!%p708_p13)
}
 0x128   : > { %589 = dma.vmem_to_hbm [thread:$0]  (%p849_p4), %s897_s26, 64, %s899_s20, %s396_s16   ;;  %v360_v29 = vsub.f32 %v358_v28, %v359_v27  ;;  %v361_v37 = vsub.f32 %v878_v12, %v357_v25 }
 0x129   : > { %s374_s21 = sld [smem:[#allocation2]]  ;;  %s574_s8 = sshll.u32 %s869_s14, 2 }
 0x12a   : > { %v362_v30 = vadd.f32 1e-05, %v360_v29  ;;  %s302_s19 = scalar_lea.vmem %s959_s4, %s574_s8 }
 0x12c   : > { %654 = vrsqrt.f32 %v362_v30  ;;  %vm369_vm7 = vweird.f32 %v362_v30 }
 0x12f   : > { %v376_v38 = vstv %s374_s21 }
 0x132   : > { %v655_v31 = vpop.eup %654 }
 0x133   : > { %v364_v32 = vmul.f32 %v655_v31, %v362_v30  ;;  %vm370_vm6 = vweird.f32 %v655_v31 }
 0x134   : > { %vm371_vm8 = vmor %vm369_vm7, %vm370_vm6 }
 0x135   : > { %v365_v33 = vmul.f32 %v655_v31, %v364_v32 }
 0x137   : > { %v366_v34 = vmul.f32 0.5, %v365_v33 }
 0x139   : > { %v367_v35 = vsub.f32 1.5, %v366_v34 }
 0x13b   : > { %v368_v36 = vmul.f32 %v655_v31, %v367_v35 }
 0x13d   : > { %v372_v39 = vsel %vm371_vm8, %v655_v31, %v368_v36 }
 0x13e   : > { %v373_v40 = vmul.f32 %v372_v39, %v361_v37 }
 0x140   : > { %vm375_vm9 = vcmp.ge.f32.partialorder %v373_v40, 0.0  ;;  %v377_v41 = vmul.f32 %v376_v38, %v373_v40 }
 0x142   : > { %v378_v42 = vsel %vm375_vm9, %v373_v40, %v377_v41 }
 0x143   : > { %379 = vst.msk [vmem:[%s302_s19] sm:$0xf] %vm342_vm3, %v378_v42 }
 0x144 PF: > { %p599_p4 = scmp.ge.s32.totalorder %s766_s28, 2  ;;  %s449_s26 = sand.u32 1, %s746_s23  }
 0x145   : > { %s450_s14 = scalar_lea.sflag [#allocation4], %s449_s26 }
 0x146   : > { %p593_p0 = pnand %p599_p4, %p856_p8 }
 0x148   : > { %p594_p1 = pneg %p593_p0 }
 0x14a   : > { %737 = dma.done.wait (%p594_p1), %s450_s14, 64  }
 0x14b   : > { %739 = vsyncadd (%p594_p1), %s450_s14, 4294967232  ;;  %s460_s20 = scalar_lea.sflag [#allocation6], %s449_s26 }
 0x14c   : > { %741 = dma.done.wait (%p594_p1), %s460_s20, 64  }
 0x14d   : > { %743 = vsyncadd (%p594_p1), %s460_s20, 4294967232  ;;  %s24_s28 = sadd.s32 1, %s766_s28   ;;  %s964_s23 = smov %s750_s24 }
 0x14e   : > { %p21_p2 = scmp.ge.s32.totalorder %s24_s28, 4   ;;  %s965_s24 = smov %s754_s25 }
 0x14f   : > { %s966_s25 = smov %s862_s11  ;;  %s967_s26 = smov %s762_s27 }
 0x150   : > { %s968_s27 = smov %s970_s30  ;;  %23 = sbr.rel (!%p21_p2) target bundleno = 8 (0x8), region = 100 }
 0x155   :  { %466 = vsyncpa [#allocation4], 1 }
 0x156   :  { %468 = vsyncpa [#allocation4 + $0x1], 1 }
 0x157   :  { %469 = vsyncpa [#allocation6], 1 }
 0x158   :  { %471 = vsyncpa [#allocation6 + $0x1], 1 }

// kernel: unet_forward.6
= control target key start
LH: loop header
LB: loop body
LE: loop exit
PB: predicated region body
PF: predicated region fallthrough
CT: control target
= control target key end

     0   :  { %s967_s0 = inlined_call_operand.vmem [shape: bf16[2,36,16], index: 0, kind: input, shape index: {}]   ;;  %s968_s1 = inlined_call_operand.vmem [shape: bf16[8,36], index: 1, kind: input, shape index: {}]   ;;  %s969_s2 = inlined_call_operand.vmem [shape: f32[8,1], index: 2, kind: input, shape index: {}]   ;;  %s970_s3 = inlined_call_operand.<no memory space> [shape: f32[1], index: 3, kind: input, shape index: {}]   ;;  %s971_s4 = inlined_call_operand.vmem [shape: f32[2,8,16], index: 4, kind: output, shape index: {0}]   ;;  %s972_s5 = inlined_call_operand.hbm [shape: f32[2,8,1], index: 5, kind: output, shape index: {1}]   ;;  %s973_s6 = inlined_call_operand.hbm [shape: f32[2,8,1], index: 6, kind: output, shape index: {2}]  }
   0x1   :  { %12 = sst [smem:[#allocation2]] %s970_s3 }
   0x2   :  { %13 = vsyncpa [#allocation4], 0 }
   0x3   :  { %15 = vsyncpa [#allocation4 + $0x1], 0 }
   0x4   :  { %16 = vsyncpa [#allocation6], 0 }
   0x5   :  { %18 = vsyncpa [#allocation6 + $0x1], 0  ;;  %s821_s23 = smov 0   ;;  %s823_s24 = smov 0  }
   0x6   :  { %s825_s25 = smov 0   ;;  %s827_s26 = smov 0  }
   0x7   :  { %s829_s27 = smov 0   ;;  %s831_s28 = smov 0  }
   0x8 LB: > { %s575_s3 = sadd.s32 4294967295, %s779_s28   ;;  %s576_s29 = sadd.s32 4294967294, %s779_s28   ;;  %s779_s28 = sphi %s831_s28, %s24_s28   ;;  %s775_s27 = sphi %s829_s27, %s980_s27   ;;  %s771_s26 = sphi %s827_s26, %s979_s26   ;;  %s767_s25 = sphi %s825_s25, %s978_s25   ;;  %s763_s24 = sphi %s823_s24, %s977_s24   ;;  %s759_s23 = sphi %s821_s23, %s976_s23  }
   0x9   : > { %s36_s30 = sadd.s32 1, %s775_s27  ;;  %s162_s7 = sadd.s32 1, %s767_s25 }
   0xa   : > { %p38_p0 = scmp.ge.s32.totalorder %s36_s30, 2  ;;  %p172_p1 = scmp.ne.s32.totalorder %s767_s25, %s763_s24 }
   0xb   : > { %p173_p2 = scmp.eq.s32.totalorder %s575_s3, 1  ;;  %p178_p3 = scmp.ne.s32.totalorder %s763_s24, %s759_s23 }
   0xc   : > { %s982_s30 = smov (%p38_p0, %s36_s30), 0  ;;  %p179_p5 = scmp.eq.s32.totalorder %s576_s29, 1 }
   0xd   : > { %p861_p4 = por %p173_p2, %p172_p1  ;;  %s159_s9 = ssub.s32 %s775_s27, %s982_s30 }
   0xe   : > { %p579_p6 = scmp.ge.s32.totalorder %s779_s28, 1  ;;  %p160_p7 = scmp.eq.s32.totalorder %s159_s9, 0 }
   0xf   : > { %p868_p8 = por %p179_p5, %p178_p3  ;;  %p243_p9 = scmp.lt.s32.totalorder %s779_s28, 3 }
  0x10   : > { %s874_s11 = scalar_select %p160_p7, %s767_s25, %s162_s7  }
  0x11   : > { %p244_p10 = pnand %p579_p6, %p243_p9 }
  0x12   : > { %p288_p11 = scmp.lt.s32.totalorder (!%p244_p10), %s771_s26, 1  ;;  %s898_s21 = sand.u32 (!%p244_p10), 1, %s763_s24  }
  0x13   : > { %247 = sbr.rel (%p244_p10) target bundleno = 334 (0x14e), region = 36  ;;  %s595_s22 = sshll.u32 (!%p244_p10), %s771_s26, 3 }
  0x14   : > { %s580_s3 = sshll.u32 (!%p244_p10), %s898_s21, 3  ;;  %s419_s9 = scalar_lea.hbm (!%p244_p10), %s972_s5, %s595_s22 }
  0x15   : > { %s280_s16 = scalar_lea.vmem (!%p244_p10), [#allocation3], %s580_s3  ;;  %s287_s19 = scalar_lea.vmem (!%p244_p10), [#allocation5], %s580_s3 }
  0x16   : > { %s421_s17 = sshll.u32 (!%p244_p10), %s280_s16, 4  ;;  %s689_s12 = scalar_lea.hbm (!%p244_p10), %s972_s5, 16  ;;  %s422_s17 = int_to_ptr.vmem [resolvable:$true] %s421_s17 }
  0x18   : > { %v781_v0 = vmov 0   ;;  %v310_v1 = vld [vmem:[%s969_s2] sm:$0xff]  ;;  %s881_s14 = scalar_select %p288_p11, %s771_s26, 1  ;;  %vm335_vm0 = vcmask 1041408   ;;  %vm331_vm1 = vcmask 293888   ;;  %vm352_vm2 = vcmask 130048  }
  0x19   : > { %664 = vset.pattern.permute.xlu0 %v781_v0  ;;  %v304_v8 = vld [vmem:[%s968_s1] sm:$0xf]  ;;  %v782_v16 = vmov 16.0   ;;  %vm390_vm4 = vcmask 7168   ;;  %s435_s26 = sshll.u32 %s287_s19, 4  ;;  %s909_s26 = int_to_ptr.vmem [resolvable:$true] %s435_s26 }
  0x1a   : > { %313 = vperm.xlu0 %664, %v310_v1   ;;  %s601_s15 = smul.u32 20, %s881_s14  ;;  %665 = vrcp.f32 %v782_v16 }
  0x1c   : > { %s295_s18 = scalar_lea.vmem %s967_s0, %s601_s15  ;;  %s433_s15 = scalar_lea.hbm %s973_s6, %s595_s22 }
  0x1d   : > { %v309_v2 = vld [vmem:[%s295_s18 + $0x10] sm:$0x3]  ;;  %v600_v6 = vld [vmem:[%s295_s18 + $0x8] sm:$0xff]  ;;  %v599_v7 = vld [vmem:[%s295_s18] sm:$0xff]  ;;  %s423_s18 = sshll.u32 %s419_s9, 4  ;;  %s437_s20 = sshll.u32 %s433_s15, 4  ;;  %s424_s18 = int_to_ptr.hbm [resolvable:$true] %s423_s18  ;;  %s911_s20 = int_to_ptr.hbm [resolvable:$true] %s437_s20 }
  0x1e   : > { %v325_v3 = vunpack.c.l.b16 %v309_v2  ;;  %s401_s22 = scalar_lea.sflag [#allocation4], %s898_s21  ;;  %s683_s29 = sshra.s32 %s424_s18, 4  ;;  %s684_s29 = int_to_ptr.hbm [resolvable:$true] %s683_s29 }
  0x1f   : > { %s685_s7 = scalar_lea.hbm %s684_s29, 8  ;;  %p690_p1 = scmp.lt.s32.totalorder %s684_s29, %s972_s5 }
  0x20   : > { %v328_v4 = vpack.c.b16 %v325_v3, %v325_v3  ;;  %v666_v17 = vpop.eup %665  ;;  %p686_p12 = scmp.ne.s32.totalorder %s684_s29, %s685_s7  ;;  %p691_p2 = scmp.lt.s32.totalorder %s689_s12, %s685_s7 }
  0x21   : > { %v361_v18 = vmul.f32 16.0, %v666_v17  ;;  %vm365_vm3 = vweird.f32 %v666_v17 }
  0x22   : > { %v337_v5 = vsel %vm335_vm0, %v328_v4, 0  ;;  %p687_p13 = pnand %p686_p12, %p861_p4  ;;  %p692_p3 = por %p691_p2, %p690_p1 }
  0x23   : > { %344 = vmatpush.bf16.msra.mxu0 %v337_v5  ;;  %v362_v19 = vsub.f32 1.0, %v361_v18 }
  0x24   : > { %p688_p0 = pneg %p687_p13 }
  0x25   : > { %v363_v20 = vmul.f32 %v666_v17, %v362_v19 }
  0x26   : > { %p693_p5 = pnand %p692_p3, %p688_p0 }
  0x27   : > { %345 = vmatpush.bf16.msra.mxu0 %v600_v6  ;;  %v364_v21 = vadd.f32 %v666_v17, %v363_v20 }
  0x29   : > { %v366_v22 = vsel %vm365_vm3, %v666_v17, %v364_v21 }
  0x2b   : > { %346 = vmatpush.bf16.msra.mxu0 %v599_v7 }
  0x2e   : > { %592 = vmatmul.msk.bf16.vlgmr.msra.gmra.mxu0 %vm331_vm1, %v304_v8 }
  0x8c   : > { %v314_v9 = vpop.permute.xlu0 %313 }
  0xab   : > { %v348_v10 = vpop.f32.mrf.mxu0 }
  0xac   : > { %v890_v11 = vadd.f32 %v348_v10, %v314_v9 }
  0xae   : > { %v353_v12 = vsel %vm352_vm2, %v890_v11, 0.0  ;;  %v356_v13 = vmul.f32 %v890_v11, %v890_v11 }
  0xaf   : > { %354 = vadd.xlane.f32.xlu0 %v353_v12 }
  0xb0   : > { %v357_v14 = vsel %vm352_vm2, %v356_v13, 0.0 }
  0xb1   : > { %358 = vadd.xlane.f32.xlu1 %v357_v14 }
  0xb3   : > { %v350_v15 = vpop.f32.mrf.mxu0 }
 0x122   : > { %v355_v23 = vpop.xlane.xlu0 %354 }
 0x123   : > { %v367_v24 = vmul.f32 %v366_v22, %v355_v23  ;;  %391 = vst.msk [vmem:[%s280_s16] sm:$0xff] %vm390_vm4, %v355_v23 }
 0x124   : > { %v359_v25 = vpop.xlane.xlu1 %358 }
 0x125   : > { %696 = shalt.err (!%p693_p5)
}
 0x126   : > { %602 = dma.vmem_to_hbm [thread:$0]  (%p861_p4), %s422_s17, 128, %s424_s18, %s401_s22   ;;  %v369_v26 = vmul.f32 %v367_v24, %v367_v24  ;;  %v368_v27 = vmul.f32 %v366_v22, %v359_v25  ;;  %392 = vst.msk [vmem:[%s287_s19] sm:$0xff] %vm390_vm4, %v359_v25 }
 0x127   : > { %s406_s16 = scalar_lea.sflag [#allocation6], %s898_s21  ;;  %s711_s3 = sshra.s32 %s911_s20, 4  ;;  %s712_s3 = int_to_ptr.hbm [resolvable:$true] %s711_s3 }
 0x128   : > { %s713_s9 = scalar_lea.hbm %s712_s3, 8  ;;  %s717_s12 = scalar_lea.hbm %s973_s6, 16 }
 0x129   : > { %p714_p6 = scmp.ne.s32.totalorder %s712_s3, %s713_s9  ;;  %p718_p10 = scmp.lt.s32.totalorder %s712_s3, %s973_s6 }
 0x12a   : > { %p719_p11 = scmp.lt.s32.totalorder %s717_s12, %s713_s9 }
 0x12b   : > { %p715_p7 = pnand %p714_p6, %p861_p4 }
 0x12c   : > { %p720_p12 = por %p719_p11, %p718_p10 }
 0x12d   : > { %p716_p9 = pneg %p715_p7 }
 0x12f   : > { %p721_p13 = pnand %p720_p12, %p716_p9 }
 0x131   : > { %724 = shalt.err (!%p721_p13)
}
 0x132   : > { %603 = dma.vmem_to_hbm [thread:$0]  (%p861_p4), %s909_s26, 128, %s911_s20, %s406_s16   ;;  %v370_v28 = vsub.f32 %v368_v27, %v369_v26  ;;  %v371_v36 = vsub.f32 %v890_v11, %v367_v24 }
 0x133   : > { %s384_s21 = sld [smem:[#allocation2]]  ;;  %s583_s8 = sshll.u32 %s881_s14, 3 }
 0x134   : > { %v372_v29 = vadd.f32 1e-05, %v370_v28  ;;  %s302_s19 = scalar_lea.vmem %s971_s4, %s583_s8 }
 0x136   : > { %667 = vrsqrt.f32 %v372_v29  ;;  %vm379_vm6 = vweird.f32 %v372_v29 }
 0x139   : > { %v386_v37 = vstv %s384_s21 }
 0x13c   : > { %v668_v30 = vpop.eup %667 }
 0x13d   : > { %v374_v31 = vmul.f32 %v668_v30, %v372_v29  ;;  %vm380_vm5 = vweird.f32 %v668_v30 }
 0x13e   : > { %vm381_vm7 = vmor %vm379_vm6, %vm380_vm5 }
 0x13f   : > { %v375_v32 = vmul.f32 %v668_v30, %v374_v31 }
 0x141   : > { %v376_v33 = vmul.f32 0.5, %v375_v32 }
 0x143   : > { %v377_v34 = vsub.f32 1.5, %v376_v33 }
 0x145   : > { %v378_v35 = vmul.f32 %v668_v30, %v377_v34 }
 0x147   : > { %v382_v38 = vsel %vm381_vm7, %v668_v30, %v378_v35 }
 0x148   : > { %v383_v39 = vmul.f32 %v382_v38, %v371_v36 }
 0x14a   : > { %vm385_vm8 = vcmp.ge.f32.partialorder %v383_v39, 0.0  ;;  %v387_v40 = vmul.f32 %v386_v37, %v383_v39 }
 0x14c   : > { %v388_v41 = vsel %vm385_vm8, %v383_v39, %v387_v40 }
 0x14d   : > { %389 = vst.msk [vmem:[%s302_s19] sm:$0xff] %vm352_vm2, %v388_v41 }
 0x14e PF: > { %p613_p4 = scmp.ge.s32.totalorder %s779_s28, 2  ;;  %s459_s26 = sand.u32 1, %s759_s23  }
 0x14f   : > { %s460_s14 = scalar_lea.sflag [#allocation4], %s459_s26 }
 0x150   : > { %p607_p0 = pnand %p613_p4, %p868_p8 }
 0x152   : > { %p608_p1 = pneg %p607_p0 }
 0x154   : > { %750 = dma.done.wait (%p608_p1), %s460_s14, 128  }
 0x155   : > { %752 = vsyncadd (%p608_p1), %s460_s14, 4294967168  ;;  %s470_s20 = scalar_lea.sflag [#allocation6], %s459_s26 }
 0x156   : > { %754 = dma.done.wait (%p608_p1), %s470_s20, 128  }
 0x157   : > { %756 = vsyncadd (%p608_p1), %s470_s20, 4294967168  ;;  %s24_s28 = sadd.s32 1, %s779_s28   ;;  %s976_s23 = smov %s763_s24 }
 0x158   : > { %p21_p2 = scmp.ge.s32.totalorder %s24_s28, 4   ;;  %s977_s24 = smov %s767_s25 }
 0x159   : > { %s978_s25 = smov %s874_s11  ;;  %s979_s26 = smov %s775_s27 }
 0x15a   : > { %s980_s27 = smov %s982_s30  ;;  %23 = sbr.rel (!%p21_p2) target bundleno = 8 (0x8), region = 100 }
 0x15f   :  { %476 = vsyncpa [#allocation4], 1 }
 0x160   :  { %478 = vsyncpa [#allocation4 + $0x1], 1 }
 0x161   :  { %479 = vsyncpa [#allocation6], 1 }
 0x162   :  { %481 = vsyncpa [#allocation6 + $0x1], 1 }

// kernel: unet_forward.7
= control target key start
LH: loop header
LB: loop body
LE: loop exit
PB: predicated region body
PF: predicated region fallthrough
CT: control target
= control target key end

     0   :  { %s1103_s0 = inlined_call_operand.vmem [shape: bf16[2,72,16], index: 0, kind: input, shape index: {}]   ;;  %s1104_s1 = inlined_call_operand.vmem [shape: bf16[16,72], index: 1, kind: input, shape index: {}]   ;;  %s1105_s2 = inlined_call_operand.vmem [shape: f32[16,1], index: 2, kind: input, shape index: {}]   ;;  %s1106_s3 = inlined_call_operand.<no memory space> [shape: f32[1], index: 3, kind: input, shape index: {}]   ;;  %s1107_s4 = inlined_call_operand.vmem [shape: f32[2,16,16], index: 4, kind: output, shape index: {0}]   ;;  %s1108_s5 = inlined_call_operand.hbm [shape: f32[2,16,1], index: 5, kind: output, shape index: {1}]   ;;  %s1109_s6 = inlined_call_operand.hbm [shape: f32[2,16,1], index: 6, kind: output, shape index: {2}]  }
   0x1   :  { %1110 = sst [smem:[#allocation9_spill]] %s1103_s0 }
   0x2   :  { %12 = sst [smem:[#allocation2]] %s1106_s3 }
   0x3   :  { %13 = vsyncpa [#allocation4], 0 }
   0x4   :  { %15 = vsyncpa [#allocation4 + $0x1], 0 }
   0x5   :  { %16 = vsyncpa [#allocation6], 0 }
   0x6   :  { %18 = vsyncpa [#allocation6 + $0x1], 0  ;;  %s921_s23 = smov 0   ;;  %s923_s24 = smov 0  }
   0x7   :  { %s925_s25 = smov 0   ;;  %s927_s26 = smov 0  }
   0x8   :  { %s929_s27 = smov 0   ;;  %s931_s28 = smov 0  }
   0x9 LB: > { %s648_s3 = sadd.s32 4294967295, %s877_s28   ;;  %s649_s29 = sadd.s32 4294967294, %s877_s28   ;;  %s877_s28 = sphi %s931_s28, %s24_s28   ;;  %s873_s27 = sphi %s929_s27, %s1118_s27   ;;  %s869_s26 = sphi %s927_s26, %s1117_s26   ;;  %s865_s25 = sphi %s925_s25, %s1116_s25   ;;  %s861_s24 = sphi %s923_s24, %s1115_s24   ;;  %s857_s23 = sphi %s921_s23, %s1114_s23  }
   0xa   : > { %s36_s30 = sadd.s32 1, %s873_s27  ;;  %s162_s7 = sadd.s32 1, %s865_s25 }
   0xb   : > { %p38_p0 = scmp.ge.s32.totalorder %s36_s30, 2  ;;  %p172_p1 = scmp.ne.s32.totalorder %s865_s25, %s861_s24 }
   0xc   : > { %p173_p2 = scmp.eq.s32.totalorder %s648_s3, 1  ;;  %p178_p3 = scmp.ne.s32.totalorder %s861_s24, %s857_s23 }
   0xd   : > { %s1120_s30 = smov (%p38_p0, %s36_s30), 0  ;;  %p179_p5 = scmp.eq.s32.totalorder %s649_s29, 1 }
   0xe   : > { %p961_p4 = por %p173_p2, %p172_p1  ;;  %s159_s9 = ssub.s32 %s873_s27, %s1120_s30 }
   0xf   : > { %p652_p6 = scmp.ge.s32.totalorder %s877_s28, 1  ;;  %p160_p7 = scmp.eq.s32.totalorder %s159_s9, 0 }
  0x10   : > { %p968_p8 = por %p179_p5, %p178_p3  ;;  %p243_p9 = scmp.lt.s32.totalorder %s877_s28, 3 }
  0x11   : > { %s974_s11 = scalar_select %p160_p7, %s865_s25, %s162_s7  }
  0x12   : > { %p244_p10 = pnand %p652_p6, %p243_p9 }
  0x13   : > { %p289_p11 = scmp.lt.s32.totalorder (!%p244_p10), %s869_s26, 1  ;;  %s1113_s0 = sld [smem:[#allocation9_spill]] (!%p244_p10) }
  0x14   : > { %247 = sbr.rel (%p244_p10) target bundleno = 352 (0x160), region = 36  ;;  %s1008_s3 = sand.u32 (!%p244_p10), 1, %s861_s24  }
  0x15   : > { %s653_s29 = sshll.u32 (!%p244_p10), %s1008_s3, 4  ;;  %s693_s7 = sshll.u32 (!%p244_p10), %s869_s26, 4 }
  0x16   : > { %s482_s13 = scalar_lea.hbm (!%p244_p10), %s1108_s5, %s693_s7  ;;  %s1020_s17 = scalar_lea.vmem (!%p244_p10), [#allocation5], %s653_s29 }
  0x17   : > { %s499_s20 = scalar_lea.hbm (!%p244_p10), %s1109_s6, %s693_s7  ;;  %s500_s21 = sshll.u32 (!%p244_p10), %s1020_s17, 4  ;;  %s1032_s21 = int_to_ptr.vmem [resolvable:$true] %s500_s21 }
  0x18   : > { %s502_s22 = sshll.u32 (!%p244_p10), %s499_s20, 4  ;;  %s1037_s22 = int_to_ptr.hbm [resolvable:$true] %s502_s22 }
  0x19   : > { %v317_v0 = vld [vmem:[%s1105_s2] sm:$0xff]  ;;  %v879_v1 = vmov 0   ;;  %s981_s14 = scalar_select %p289_p11, %s869_s26, 1  ;;  %v318_v3 = vld [vmem:[%s1105_s2 + $0x8] sm:$0xff]  ;;  %vm365_vm0 = vcmask 1043456   ;;  %vm361_vm1 = vcmask 588800  }
  0x1a   : > { %760 = vset.pattern.permute.xlu0 %v879_v1  ;;  %v688_v11 = vld [vmem:[%s1104_s1] sm:$0xff]  ;;  %vm383_vm2 = vcmask 130048   ;;  %v880_v24 = vmov 16.0   ;;  %vm449_vm4 = vcmask 7168   ;;  %s485_s26 = sshll.u32 %s482_s13, 4  ;;  %s1030_s26 = int_to_ptr.hbm [resolvable:$true] %s485_s26 }
  0x1b   : > { %321 = vperm.xlu0 %760, %v317_v0   ;;  %s695_s15 = smul.u32 36, %s981_s14  ;;  %761 = vrcp.f32 %v880_v24  ;;  %s781_s7 = sshra.s32 %s1030_s26, 4  ;;  %s782_s7 = int_to_ptr.hbm [resolvable:$true] %s781_s7 }
  0x1c   : > { %s783_s9 = scalar_lea.hbm %s782_s7, 16  ;;  %p788_p1 = scmp.lt.s32.totalorder %s782_s7, %s1108_s5 }
  0x1d   : > { %s296_s18 = scalar_lea.vmem %s1113_s0, %s695_s15  ;;  %s281_s15 = scalar_lea.vmem [#allocation3], %s653_s29 }
  0x1e   : > { %v316_v2 = vld [vmem:[%s296_s18 + $0x20] sm:$0xf]  ;;  %v692_v7 = vld [vmem:[%s296_s18 + $0x18] sm:$0xff]  ;;  %v691_v8 = vld [vmem:[%s296_s18 + $0x10] sm:$0xff]  ;;  %s483_s16 = sshll.u32 %s281_s15, 4  ;;  %s463_s29 = scalar_lea.sflag [#allocation4], %s1008_s3  ;;  %s1027_s16 = int_to_ptr.vmem [resolvable:$true] %s483_s16 }
  0x1f   : > { %v351_v4 = vunpack.c.l.b16 %v316_v2  ;;  %v690_v9 = vld [vmem:[%s296_s18 + $0x8] sm:$0xff]  ;;  %v689_v10 = vld [vmem:[%s296_s18] sm:$0xff]  ;;  %p784_p12 = scmp.ne.s32.totalorder %s782_s7, %s783_s9  ;;  %s787_s18 = scalar_lea.hbm %s1108_s5, 32 }
  0x20   : > { %p789_p2 = scmp.lt.s32.totalorder %s787_s18, %s783_s9 }
  0x21   : > { %v356_v5 = vpack.c.b16 %v351_v4, %v351_v4  ;;  %v762_v25 = vpop.eup %761  ;;  %p785_p13 = pnand %p784_p12, %p961_p4 }
  0x22   : > { %v399_v26 = vmul.f32 16.0, %v762_v25  ;;  %vm403_vm3 = vweird.f32 %v762_v25  ;;  %p790_p3 = por %p789_p2, %p788_p1 }
  0x23   : > { %326 = vperm.xlu0 %760, %v318_v3   ;;  %v367_v6 = vsel %vm365_vm0, %v356_v5, 0  ;;  %p786_p0 = pneg %p785_p13 }
  0x24   : > { %372 = vmatpush.bf16.msra.mxu0 %v367_v6  ;;  %v400_v27 = vsub.f32 1.0, %v399_v26 }
  0x25   : > { %p791_p5 = pnand %p790_p3, %p786_p0 }
  0x26   : > { %v401_v28 = vmul.f32 %v762_v25, %v400_v27 }
  0x28   : > { %373 = vmatpush.bf16.msra.mxu0 %v692_v7  ;;  %v402_v29 = vadd.f32 %v762_v25, %v401_v28 }
  0x2a   : > { %v404_v30 = vsel %vm403_vm3, %v762_v25, %v402_v29 }
  0x2c   : > { %374 = vmatpush.bf16.msra.mxu0 %v691_v8 }
  0x30   : > { %375 = vmatpush.bf16.msra.mxu0 %v690_v9 }
  0x34   : > { %376 = vmatpush.bf16.msra.mxu0 %v689_v10 }
  0x37   : > { %678 = vmatmul.msk.bf16.vlgmr.msra.gmra.mxu0 %vm361_vm1, %v688_v11 }
  0x8d   : > { %v322_v12 = vpop.permute.xlu0 %321 }
  0x95   : > { %v327_v18 = vpop.permute.xlu0 %326 }
  0xb4   : > { %v378_v13 = vpop.f32.mrf.mxu0 }
  0xb5   : > { %v993_v14 = vadd.f32 %v378_v13, %v322_v12 }
  0xb7   : > { %v384_v15 = vsel %vm383_vm2, %v993_v14, 0.0  ;;  %v390_v16 = vmul.f32 %v993_v14, %v993_v14 }
  0xb8   : > { %385 = vadd.xlane.f32.xlu1 %v384_v15 }
  0xb9   : > { %v392_v17 = vsel %vm383_vm2, %v390_v16, 0.0 }
  0xba   : > { %393 = vadd.xlane.f32.xlu2 %v392_v17 }
  0xbc   : > { %v380_v19 = vpop.f32.mrf.mxu0 }
  0xbd   : > { %v1000_v20 = vadd.f32 %v380_v19, %v327_v18 }
  0xbf   : > { %v387_v21 = vsel %vm383_vm2, %v1000_v20, 0.0  ;;  %v391_v22 = vmul.f32 %v1000_v20, %v1000_v20 }
  0xc0   : > { %388 = vadd.xlane.f32.xlu1 %v387_v21 }
  0xc1   : > { %v395_v23 = vsel %vm383_vm2, %v391_v22, 0.0 }
  0xc2   : > { %396 = vadd.xlane.f32.xlu2 %v395_v23 }
 0x12b   : > { %v386_v31 = vpop.xlane.xlu1 %385 }
 0x12c   : > { %v1015_v32 = vmul.f32 %v404_v30, %v386_v31  ;;  %450 = vst.msk [vmem:[%s281_s15] sm:$0xff] %vm449_vm4, %v386_v31 }
 0x12d   : > { %v394_v33 = vpop.xlane.xlu2 %393 }
 0x12e   : > { %v409_v34 = vmul.f32 %v1015_v32, %v1015_v32  ;;  %v407_v35 = vmul.f32 %v404_v30, %v394_v33  ;;  %452 = vst.msk [vmem:[%s1020_s17] sm:$0xff] %vm449_vm4, %v394_v33 }
 0x130   : > { %v411_v36 = vsub.f32 %v407_v35, %v409_v34 }
 0x132   : > { %v415_v37 = vadd.f32 1e-05, %v411_v36 }
 0x133   : > { %v389_v38 = vpop.xlane.xlu1 %388 }
 0x134   : > { %763 = vrsqrt.f32 %v415_v37  ;;  %v1034_v39 = vmul.f32 %v404_v30, %v389_v38  ;;  %451 = vst.msk [vmem:[%s281_s15 + $0x8] sm:$0xff] %vm449_vm4, %v389_v38 }
 0x135   : > { %v397_v40 = vpop.xlane.xlu2 %396 }
 0x136   : > { %794 = shalt.err (!%p791_p5)
}
 0x137   : > { %s881_s15 = smov 128   ;;  %s882_s0 = smov 8   ;;  %v410_v41 = vmul.f32 %v1034_v39, %v1034_v39  ;;  %v408_v42 = vmul.f32 %v404_v30, %v397_v40  ;;  %453 = vst.msk [vmem:[%s1020_s17 + $0x8] sm:$0xff] %vm449_vm4, %v397_v40 }
 0x138   : > { %696 = dma.vmem_to_hbm [thread:$0]  (%p961_p4), %s1027_s16, 256, %s1030_s26, %s463_s29, %s881_s15, %s881_s15, %s882_s0  }
 0x139   : > { %s468_s7 = scalar_lea.sflag [#allocation6], %s1008_s3  ;;  %s809_s9 = sshra.s32 %s1037_s22, 4  ;;  %s810_s9 = int_to_ptr.hbm [resolvable:$true] %s809_s9 }
 0x13a   : > { %s811_s12 = scalar_lea.hbm %s810_s9, 16  ;;  %s815_s19 = scalar_lea.hbm %s1109_s6, 32 }
 0x13b   : > { %p812_p6 = scmp.ne.s32.totalorder %s810_s9, %s811_s12  ;;  %p816_p10 = scmp.lt.s32.totalorder %s810_s9, %s1109_s6 }
 0x13c   : > { %p817_p11 = scmp.lt.s32.totalorder %s815_s19, %s811_s12 }
 0x13d   : > { %p813_p7 = pnand %p812_p6, %p961_p4 }
 0x13e   : > { %p818_p12 = por %p817_p11, %p816_p10 }
 0x13f   : > { %p814_p9 = pneg %p813_p7 }
 0x141   : > { %p819_p13 = pnand %p818_p12, %p814_p9 }
 0x143   : > { %822 = shalt.err (!%p819_p13)
}
 0x144   : > { %697 = dma.vmem_to_hbm [thread:$0]  (%p961_p4), %s1032_s21, 256, %s1037_s22, %s468_s7, %s881_s15, %s881_s15, %s882_s0   ;;  %v412_v43 = vsub.f32 %v408_v42, %v410_v41  ;;  %v764_v44 = vpop.eup %763  ;;  %vm423_vm6 = vweird.f32 %v415_v37  ;;  %v413_v53 = vsub.f32 %v993_v14, %v1015_v32  ;;  %v414_v63 = vsub.f32 %v1000_v20, %v1034_v39 }
 0x145   : > { %v418_v46 = vmul.f32 %v764_v44, %v415_v37  ;;  %s439_s3 = sld [smem:[#allocation2]]  ;;  %vm424_vm5 = vweird.f32 %v764_v44  ;;  %s687_s0 = sshll.u32 %s981_s14, 4 }
 0x146   : > { %v416_v45 = vadd.f32 1e-05, %v412_v43  ;;  %vm425_vm7 = vmor %vm423_vm6, %vm424_vm5  ;;  %s304_s26 = scalar_lea.vmem %s1107_s4, %s687_s0 }
 0x147   : > { %v419_v47 = vmul.f32 %v764_v44, %v418_v46 }
 0x148   : > { %765 = vrsqrt.f32 %v416_v45  ;;  %vm433_vm10 = vweird.f32 %v416_v45 }
 0x149   : > { %v420_v48 = vmul.f32 0.5, %v419_v47 }
 0x14b   : > { %v421_v49 = vsub.f32 1.5, %v420_v48  ;;  %v442_v55 = vstv %s439_s3 }
 0x14d   : > { %v422_v51 = vmul.f32 %v764_v44, %v421_v49 }
 0x14e   : > { %v766_v50 = vpop.eup %765 }
 0x14f   : > { %v428_v52 = vmul.f32 %v766_v50, %v416_v45  ;;  %v426_v54 = vsel %vm425_vm7, %v764_v44, %v422_v51  ;;  %vm434_vm9 = vweird.f32 %v766_v50 }
 0x150   : > { %v437_v57 = vmul.f32 %v426_v54, %v413_v53  ;;  %vm435_vm11 = vmor %vm433_vm10, %vm434_vm9 }
 0x151   : > { %v429_v56 = vmul.f32 %v766_v50, %v428_v52 }
 0x152   : > { %vm440_vm8 = vcmp.ge.f32.partialorder %v437_v57, 0.0  ;;  %v443_v59 = vmul.f32 %v442_v55, %v437_v57 }
 0x153   : > { %v430_v58 = vmul.f32 0.5, %v429_v56 }
 0x154   : > { %v445_v61 = vsel %vm440_vm8, %v437_v57, %v443_v59 }
 0x155   : > { %v431_v60 = vsub.f32 1.5, %v430_v58  ;;  %447 = vst.msk [vmem:[%s304_s26] sm:$0xff] %vm383_vm2, %v445_v61 }
 0x157   : > { %v432_v62 = vmul.f32 %v766_v50, %v431_v60 }
 0x159   : > { %v436_v0 = vsel %vm435_vm11, %v766_v50, %v432_v62 }
 0x15a   : > { %v438_v1 = vmul.f32 %v436_v0, %v414_v63 }
 0x15c   : > { %vm441_vm12 = vcmp.ge.f32.partialorder %v438_v1, 0.0  ;;  %v444_v2 = vmul.f32 %v442_v55, %v438_v1 }
 0x15e   : > { %v446_v3 = vsel %vm441_vm12, %v438_v1, %v444_v2 }
 0x15f   : > { %448 = vst.msk [vmem:[%s304_s26 + $0x8] sm:$0xff] %vm383_vm2, %v446_v3 }
 0x160 PF: > { %p707_p4 = scmp.ge.s32.totalorder %s877_s28, 2  ;;  %s528_s14 = sand.u32 1, %s857_s23  }
 0x161   : > { %s529_s21 = scalar_lea.sflag [#allocation4], %s528_s14 }
 0x162   : > { %p701_p0 = pnand %p707_p4, %p968_p8 }
 0x164   : > { %p702_p1 = pneg %p701_p0 }
 0x166   : > { %848 = dma.done.wait (%p702_p1), %s529_s21, 256  }
 0x167   : > { %850 = vsyncadd (%p702_p1), %s529_s21, 4294967040  ;;  %s539_s22 = scalar_lea.sflag [#allocation6], %s528_s14 }
 0x168   : > { %852 = dma.done.wait (%p702_p1), %s539_s22, 256  }
 0x169   : > { %854 = vsyncadd (%p702_p1), %s539_s22, 4294967040  ;;  %s24_s28 = sadd.s32 1, %s877_s28   ;;  %s1114_s23 = smov %s861_s24 }
 0x16a   : > { %p21_p2 = scmp.ge.s32.totalorder %s24_s28, 4   ;;  %s1115_s24 = smov %s865_s25 }
 0x16b   : > { %s1116_s25 = smov %s974_s11  ;;  %s1117_s26 = smov %s873_s27 }
 0x16c   : > { %s1118_s27 = smov %s1120_s30  ;;  %23 = sbr.rel (!%p21_p2) target bundleno = 9 (0x9), region = 100 }
 0x171   :  { %545 = vsyncpa [#allocation4], 1 }
 0x172   :  { %547 = vsyncpa [#allocation4 + $0x1], 1 }
 0x173   :  { %548 = vsyncpa [#allocation6], 1 }
 0x174   :  { %550 = vsyncpa [#allocation6 + $0x1], 1 }

// kernel: tile.12
= control target key start
LH: loop header
LB: loop body
LE: loop exit
PB: predicated region body
PF: predicated region fallthrough
CT: control target
= control target key end

     0   :  { %s22_s0 = inlined_call_operand.vmem [shape: f32[4], index: 0, kind: input, shape index: {}]   ;;  %s23_s1 = inlined_call_operand.vmem [shape: f32[4,4], index: 1, kind: output, shape index: {}]  }
   0x1   :  { %v4_v0 = vld [vmem:[%s22_s0] ss:$0 sm:$0xff] }
   0x2   :  { %5 = vst [vmem:[%s23_s1] sm:$0xf] %v4_v0 }

// kernel: tile.0
= control target key start
LH: loop header
LB: loop body
LE: loop exit
PB: predicated region body
PF: predicated region fallthrough
CT: control target
= control target key end

     0   :  { %s34_s8 = smov 125   ;;  %s35_s9 = smov 126   ;;  %vm7_vm0 = vcmask 7168   ;;  %s61_s0 = inlined_call_operand.vmem [shape: f32[4,4], index: 0, kind: input, shape index: {}]   ;;  %s62_s1 = inlined_call_operand.vmem [shape: f32[16,1], index: 1, kind: output, shape index: {}]  }
   0x1   :  { %v4_v0 = vld [vmem:[%s61_s0] sm:$0xf]  ;;  %s33_s0 = smov 127  }
   0x2   :  { %5 = vst [vmem:[#allocation0] sm:$0xf] %v4_v0 }
   0x9   :  { %v9_v1 = vld [vmem:[#allocation0] sm:$0xf]  }
   0xa   :  { %v21_v2 = vld [vmem:[#allocation0] sm:$0xf]   ;;  %10 = vrot.lane.b32.xlu0 %v9_v1, %s33_s0 }
   0xb   :  { %22 = vrot.lane.b32.xlu1 %v21_v2, %s34_s8  ;;  %v15_v3 = vld [vmem:[#allocation0] sm:$0xf]  }
   0xc   :  { %v6_v4 = vld [vmem:[#allocation0] sm:$0xf]  }
   0xd   :  { %8 = vst.msk [vmem:[%s62_s1] ss:$4 sm:$0xf] %vm7_vm0, %v6_v4  }
  0x12   :  { %16 = vrot.lane.b32.xlu0 %v15_v3, %s35_s9 }
  0x7c   :  { %v11_v5 = vpop.permute.xlu0 %10  }
  0x7d   :  { %v23_v6 = vpop.permute.xlu1 %22   ;;  %27 = vst.msk [vmem:[%s62_s1 + $0x1] ss:$4 sm:$0xf] %vm7_vm0, %v11_v5  }
  0x7e   :  { %29 = vst.msk [vmem:[%s62_s1 + $0x3] ss:$4 sm:$0xf] %vm7_vm0, %v23_v6  }
  0x84   :  { %v17_v7 = vpop.permute.xlu0 %16  }
  0x85   :  { %28 = vst.msk [vmem:[%s62_s1 + $0x2] ss:$4 sm:$0xf] %vm7_vm0, %v17_v7  }

// kernel: unet_forward.8
= control target key start
LH: loop header
LB: loop body
LE: loop exit
PB: predicated region body
PF: predicated region fallthrough
CT: control target
= control target key end

     0   :  { %s1245_s0 = inlined_call_operand.vmem [shape: bf16[2,96,16], index: 0, kind: input, shape index: {}]   ;;  %s1246_s1 = inlined_call_operand.vmem [shape: bf16[16,96], index: 1, kind: input, shape index: {}]   ;;  %s1247_s2 = inlined_call_operand.vmem [shape: f32[16,1], index: 2, kind: input, shape index: {}]   ;;  %s1248_s3 = inlined_call_operand.<no memory space> [shape: f32[1], index: 3, kind: input, shape index: {}]   ;;  %s1249_s4 = inlined_call_operand.vmem [shape: f32[2,16,16], index: 4, kind: output, shape index: {0}]   ;;  %s1250_s5 = inlined_call_operand.hbm [shape: f32[2,16,1], index: 5, kind: output, shape index: {1}]   ;;  %s1251_s6 = inlined_call_operand.hbm [shape: f32[2,16,1], index: 6, kind: output, shape index: {2}]  }
   0x1   :  { %1252 = sst [smem:[#allocation9_spill]] %s1245_s0 }
   0x2   :  { %12 = sst [smem:[#allocation2]] %s1248_s3 }
   0x3   :  { %13 = vsyncpa [#allocation4], 0 }
   0x4   :  { %15 = vsyncpa [#allocation4 + $0x1], 0 }
   0x5   :  { %16 = vsyncpa [#allocation6], 0 }
   0x6   :  { %18 = vsyncpa [#allocation6 + $0x1], 0  ;;  %s1068_s23 = smov 0   ;;  %s1070_s24 = smov 0  }
   0x7   :  { %s1072_s25 = smov 0   ;;  %s1074_s26 = smov 0  }
   0x8   :  { %s1076_s27 = smov 0   ;;  %s1078_s28 = smov 0  }
   0x9 LB: > { %s775_s3 = sadd.s32 4294967295, %s1023_s28   ;;  %s776_s29 = sadd.s32 4294967294, %s1023_s28   ;;  %s1023_s28 = sphi %s1078_s28, %s24_s28   ;;  %s1019_s27 = sphi %s1076_s27, %s1260_s27   ;;  %s1015_s26 = sphi %s1074_s26, %s1259_s26   ;;  %s1011_s25 = sphi %s1072_s25, %s1258_s25   ;;  %s1007_s24 = sphi %s1070_s24, %s1257_s24   ;;  %s1003_s23 = sphi %s1068_s23, %s1256_s23  }
   0xa   : > { %s36_s30 = sadd.s32 1, %s1019_s27  ;;  %s162_s7 = sadd.s32 1, %s1011_s25 }
   0xb   : > { %p38_p0 = scmp.ge.s32.totalorder %s36_s30, 2  ;;  %p172_p1 = scmp.ne.s32.totalorder %s1011_s25, %s1007_s24 }
   0xc   : > { %p173_p2 = scmp.eq.s32.totalorder %s775_s3, 1  ;;  %p178_p3 = scmp.ne.s32.totalorder %s1007_s24, %s1003_s23 }
   0xd   : > { %s1262_s30 = smov (%p38_p0, %s36_s30), 0  ;;  %p179_p5 = scmp.eq.s32.totalorder %s776_s29, 1 }
   0xe   : > { %p1108_p4 = por %p173_p2, %p172_p1  ;;  %s159_s9 = ssub.s32 %s1019_s27, %s1262_s30 }
   0xf   : > { %p779_p6 = scmp.ge.s32.totalorder %s1023_s28, 1  ;;  %p160_p7 = scmp.eq.s32.totalorder %s159_s9, 0 }
  0x10   : > { %p1115_p8 = por %p179_p5, %p178_p3  ;;  %p243_p9 = scmp.lt.s32.totalorder %s1023_s28, 3 }
  0x11   : > { %s1121_s11 = scalar_select %p160_p7, %s1011_s25, %s162_s7  }
  0x12   : > { %p244_p10 = pnand %p779_p6, %p243_p9 }
  0x13   : > { %p289_p11 = scmp.lt.s32.totalorder (!%p244_p10), %s1015_s26, 1  ;;  %s1255_s0 = sld [smem:[#allocation9_spill]] (!%p244_p10) }
  0x14   : > { %247 = sbr.rel (%p244_p10) target bundleno = 616 (0x268), region = 36  ;;  %s1155_s3 = sand.u32 (!%p244_p10), 1, %s1007_s24  }
  0x15   : > { %s780_s29 = sshll.u32 (!%p244_p10), %s1155_s3, 4  ;;  %s933_s17 = scalar_lea.hbm (!%p244_p10), %s1250_s5, 32 }
  0x16   : > { %s1158_s7 = scalar_lea.vmem (!%p244_p10), [#allocation3], %s780_s29  ;;  %s1162_s9 = scalar_lea.vmem (!%p244_p10), [#allocation5], %s780_s29 }
  0x17   : > { %s610_s12 = sshll.u32 (!%p244_p10), %s1158_s7, 4  ;;  %s627_s13 = sshll.u32 (!%p244_p10), %s1162_s9, 4  ;;  %s1176_s12 = int_to_ptr.vmem [resolvable:$true] %s610_s12  ;;  %s1178_s13 = int_to_ptr.vmem [resolvable:$true] %s627_s13 }
  0x19   : > { %v321_v0 = vld [vmem:[%s1247_s2 + $0x8] sm:$0xff]  ;;  %v1025_v1 = vmov 0   ;;  %s1128_s14 = scalar_select %p289_p11, %s1015_s26, 1  ;;  %v320_v3 = vld [vmem:[%s1247_s2] sm:$0xff]  ;;  %vm373_vm0 = vcmask 785408   ;;  %vm391_vm1 = vcmask 130048   ;;  %v406_v22 = vlaneseq }
  0x1a   : > { %904 = vset.pattern.permute.xlu0 %v1025_v1  ;;  %905 = vset.pattern.permute.xlu1 %v1025_v1  ;;  %v829_v9 = vld [vmem:[%s1246_s1] sm:$0xff]  ;;  %vm576_vm2 = vcmask 7168   ;;  %v1026_v30 = vmov 0.0   ;;  %v1027_v36 = vmov 64.0  }
  0x1b   : > { %329 = vperm.xlu0 %904, %v321_v0   ;;  %906 = vset.pattern.permute.xlu2 %v1025_v1  ;;  %s838_s15 = smul.u32 48, %s1128_s14  ;;  %v407_v23 = vshrl.u32 %v406_v22, 7  ;;  %v434_v24 = vand.u32 127, %v406_v22  ;;  %907 = vrcp.f32 %v1027_v36 }
  0x1d   : > { %s296_s18 = scalar_lea.vmem %s1255_s0, %s838_s15  ;;  %v413_v26 = vand.u32 3, %v407_v23  ;;  %v439_v27 = vand.u32 3, %v434_v24  ;;  %v408_v29 = vadd.s32 8, %v407_v23  ;;  %s836_s15 = sshll.u32 %s1015_s26, 4 }
  0x1e   : > { %v835_v2 = vld [vmem:[%s296_s18 + $0x28] sm:$0xff]  ;;  %v834_v4 = vld [vmem:[%s296_s18 + $0x20] sm:$0xff]  ;;  %v833_v5 = vld [vmem:[%s296_s18 + $0x18] sm:$0xff]  ;;  %s626_s21 = scalar_lea.hbm %s1251_s6, %s836_s15  ;;  %s590_s26 = scalar_lea.sflag [#allocation4], %s1155_s3 }
  0x1f   : > { %379 = vmatpush.bf16.msra.mxu0 %v835_v2  ;;  %v832_v6 = vld [vmem:[%s296_s18 + $0x10] sm:$0xff]  ;;  %v831_v7 = vld [vmem:[%s296_s18 + $0x8] sm:$0xff]  ;;  %v830_v8 = vld [vmem:[%s296_s18] sm:$0xff]  ;;  %vm447_vm3 = vcmp.eq.s32.totalorder %v413_v26, %v439_v27  ;;  %v420_v33 = vand.u32 3, %v408_v29  ;;  %s609_s18 = scalar_lea.hbm %s1250_s5, %s836_s15  ;;  %s629_s29 = sshll.u32 %s626_s21, 4  ;;  %s1187_s29 = int_to_ptr.hbm [resolvable:$true] %s629_s29 }
  0x20   : > { %v814_v31 = vsel %vm447_vm3, 1.0, %v1026_v30  ;;  %s612_s22 = sshll.u32 %s609_s18, 4  ;;  %s613_s22 = int_to_ptr.hbm [resolvable:$true] %s612_s22 }
  0x21   : > { %vm448_vm4 = vcmp.eq.s32.totalorder %v420_v33, %v439_v27  ;;  %v908_v37 = vpop.eup %907 }
  0x22   : > { %v815_v35 = vsel %vm448_vm4, 1.0, %v1026_v30  ;;  %v506_v38 = vmul.f32 64.0, %v908_v37  ;;  %vm510_vm5 = vweird.f32 %v908_v37 }
  0x23   : > { %324 = vperm.xlu0 %904, %v320_v3   ;;  %380 = vmatpush.bf16.msra.mxu0 %v834_v4 }
  0x24   : > { %v507_v39 = vsub.f32 1.0, %v506_v38 }
  0x26   : > { %v508_v40 = vmul.f32 %v908_v37, %v507_v39 }
  0x27   : > { %381 = vmatpush.bf16.msra.mxu0 %v833_v5 }
  0x28   : > { %v509_v41 = vadd.f32 %v908_v37, %v508_v40 }
  0x2a   : > { %v511_v42 = vsel %vm510_vm5, %v908_v37, %v509_v41 }
  0x2b   : > { %382 = vmatpush.bf16.msra.mxu0 %v832_v6 }
  0x2f   : > { %383 = vmatpush.bf16.msra.mxu0 %v831_v7 }
  0x33   : > { %384 = vmatpush.bf16.msra.mxu0 %v830_v8 }
  0x36   : > { %813 = vmatmul.msk.bf16.vlgmr.msra.gmra.mxu0 %vm373_vm0, %v829_v9 }
  0x8d   : > { %v330_v10 = vpop.permute.xlu0 %329 }
  0x95   : > { %v325_v14 = vpop.permute.xlu0 %324 }
  0xb3   : > { %v386_v11 = vpop.f32.mrf.mxu0 }
  0xb4   : > { %v1146_v17 = vadd.f32 %v386_v11, %v325_v14 }
  0xb6   : > { %v398_v19 = vmul.f32 %v1146_v17, %v1146_v17  ;;  %v392_v20 = vsel %vm391_vm1, %v1146_v17, 0.0 }
  0xb8   : > { %v400_v21 = vsel %vm391_vm1, %v398_v19, 0.0 }
  0xbb   : > { %v388_v12 = vpop.f32.mrf.mxu0 }
  0xbc   : > { %v1140_v13 = vadd.f32 %v388_v12, %v330_v10 }
  0xbe   : > { %v395_v15 = vsel %vm391_vm1, %v1140_v13, 0.0  ;;  %v399_v16 = vmul.f32 %v1140_v13, %v1140_v13 }
  0xbf   : > { %396 = vadd.xlane.f32.xlu2 %v395_v15 }
  0xc0   : > { %v403_v18 = vsel %vm391_vm1, %v399_v16, 0.0 }
  0xc1   : > { %404 = vadd.xlane.f32.xlu1 %v403_v18 }
  0xc7   : > { %393 = vadd.xlane.f32.xlu2 %v392_v20 }
  0xc9   : > { %401 = vadd.xlane.f32.xlu1 %v400_v21 }
 0x132   : > { %v397_v25 = vpop.xlane.xlu2 %396 }
 0x133   : > { %578 = vst.msk [vmem:[%s1158_s7 + $0x8] sm:$0xff] %vm576_vm2, %v397_v25  ;;  %473 = vmatpush.msra.mxu1 %v397_v25 }
 0x134   : > { %v405_v28 = vpop.xlane.xlu1 %404 }
 0x135   : > { %580 = vst.msk [vmem:[%s1162_s9 + $0x8] sm:$0xff] %vm576_vm2, %v405_v28  ;;  %496 = vmatpush.msra.mxu2 %v405_v28 }
 0x13a   : > { %v394_v32 = vpop.xlane.xlu2 %393 }
 0x13b   : > { %577 = vst.msk [vmem:[%s1158_s7] sm:$0xff] %vm576_vm2, %v394_v32  ;;  %474 = vmatpush.msra.mxu1 %v394_v32  ;;  %s927_s7 = sshra.s32 %s613_s22, 4  ;;  %s928_s7 = int_to_ptr.hbm [resolvable:$true] %s927_s7 }
 0x13c   : > { %v402_v34 = vpop.xlane.xlu1 %401  ;;  %816 = vmatmul.msk.f32.vlgmr.msra.gmra.mxu1 %vm391_vm1, %v814_v31  ;;  %p934_p1 = scmp.lt.s32.totalorder %s928_s7, %s1250_s5 }
 0x13d   : > { %579 = vst.msk [vmem:[%s1162_s9] sm:$0xff] %vm576_vm2, %v402_v34  ;;  %497 = vmatpush.msra.mxu2 %v402_v34  ;;  %s929_s9 = scalar_lea.hbm %s928_s7, 16 }
 0x13e   : > { %818 = vmatmul.msk.f32.vlgmr.msra.gmra.mxu2 %vm391_vm1, %v814_v31  ;;  %p930_p12 = scmp.ne.s32.totalorder %s928_s7, %s929_s9  ;;  %p935_p2 = scmp.lt.s32.totalorder %s933_s17, %s929_s9 }
 0x140   : > { %p931_p13 = pnand %p930_p12, %p1108_p4  ;;  %p936_p3 = por %p935_p2, %p934_p1 }
 0x142   : > { %p932_p0 = pneg %p931_p13 }
 0x144   : > { %817 = vmatmul.msk.f32.gmra.mxu1 %vm391_vm1, %v815_v35  ;;  %p937_p5 = pnand %p936_p3, %p932_p0 }
 0x146   : > { %819 = vmatmul.msk.f32.gmra.mxu2 %vm391_vm1, %v815_v35 }
 0x1b9   : > { %v476_v43 = vpop.f32.mrf.mxu1 }
 0x1ba   : > { %v512_v44 = vmul.f32 %v511_v42, %v476_v43 }
 0x1bc   : > { %522 = vperm.xlu0 %904, %v512_v44   ;;  %v516_v45 = vmul.f32 %v512_v44, %v512_v44 }
 0x1c1   : > { %v479_v46 = vpop.f32.mrf.mxu1  ;;  %v499_v47 = vpop.f32.mrf.mxu2 }
 0x1c2   : > { %v513_v48 = vmul.f32 %v511_v42, %v479_v46  ;;  %v514_v49 = vmul.f32 %v511_v42, %v499_v47 }
 0x1c4   : > { %v518_v50 = vsub.f32 %v514_v49, %v516_v45  ;;  %527 = vperm.xlu1 %905, %v513_v48   ;;  %v517_v52 = vmul.f32 %v513_v48, %v513_v48 }
 0x1c6   : > { %v532_v51 = vadd.f32 1e-05, %v518_v50 }
 0x1c8   : > { %909 = vrsqrt.f32 %v532_v51  ;;  %vm540_vm7 = vweird.f32 %v532_v51 }
 0x1c9   : > { %v502_v53 = vpop.f32.mrf.mxu2 }
 0x1ca   : > { %v515_v54 = vmul.f32 %v511_v42, %v502_v53 }
 0x1cc   : > { %v519_v55 = vsub.f32 %v515_v54, %v517_v52 }
 0x1ce   : > { %v910_v56 = vpop.eup %909  ;;  %v533_v57 = vadd.f32 1e-05, %v519_v55 }
 0x1cf   : > { %v535_v58 = vmul.f32 %v910_v56, %v532_v51  ;;  %vm541_vm6 = vweird.f32 %v910_v56 }
 0x1d0   : > { %911 = vrsqrt.f32 %v533_v57  ;;  %vm542_vm8 = vmor %vm540_vm7, %vm541_vm6 }
 0x1d1   : > { %v536_v59 = vmul.f32 %v910_v56, %v535_v58 }
 0x1d3   : > { %v537_v60 = vmul.f32 0.5, %v536_v59 }
 0x1d5   : > { %v538_v61 = vsub.f32 1.5, %v537_v60 }
 0x1d6   : > { %v912_v62 = vpop.eup %911 }
 0x1d7   : > { %v545_v63 = vmul.f32 %v912_v62, %v533_v57  ;;  %v539_v0 = vmul.f32 %v910_v56, %v538_v61 }
 0x1d9   : > { %v543_v1 = vsel %vm542_vm8, %v910_v56, %v539_v0  ;;  %v546_v2 = vmul.f32 %v912_v62, %v545_v63 }
 0x1da   : > { %556 = vperm.xlu2 %906, %v543_v1  }
 0x1db   : > { %v547_v3 = vmul.f32 0.5, %v546_v2 }
 0x1dc   : > { %940 = shalt.err (!%p937_p5)
}
 0x1dd   : > { %s1028_s20 = smov 128   ;;  %s1029_s21 = smov 8  }
 0x1de   : > { %839 = dma.vmem_to_hbm [thread:$0]  (%p1108_p4), %s1176_s12, 256, %s613_s22, %s590_s26, %s1028_s20, %s1028_s20, %s1029_s21  }
 0x1df   : > { %s595_s0 = scalar_lea.sflag [#allocation6], %s1155_s3  ;;  %s955_s16 = sshra.s32 %s1187_s29, 4  ;;  %s956_s16 = int_to_ptr.hbm [resolvable:$true] %s955_s16 }
 0x1e0   : > { %s957_s15 = scalar_lea.hbm %s956_s16, 16  ;;  %s961_s17 = scalar_lea.hbm %s1251_s6, 32 }
 0x1e1   : > { %p958_p6 = scmp.ne.s32.totalorder %s956_s16, %s957_s15  ;;  %p962_p10 = scmp.lt.s32.totalorder %s956_s16, %s1251_s6 }
 0x1e2   : > { %p963_p11 = scmp.lt.s32.totalorder %s961_s17, %s957_s15 }
 0x1e3   : > { %p959_p7 = pnand %p958_p6, %p1108_p4 }
 0x1e4   : > { %p964_p12 = por %p963_p11, %p962_p10 }
 0x1e5   : > { %p960_p9 = pneg %p959_p7 }
 0x1e7   : > { %p965_p13 = pnand %p964_p12, %p960_p9 }
 0x1e9   : > { %968 = shalt.err (!%p965_p13)
}
 0x1ea   : > { %840 = dma.vmem_to_hbm [thread:$0]  (%p1108_p4), %s1178_s13, 256, %s1187_s29, %s595_s0, %s1028_s20, %s1028_s20, %s1029_s21   ;;  %v548_v4 = vsub.f32 1.5, %v547_v3  ;;  %vm551_vm9 = vweird.f32 %v912_v62  ;;  %vm550_vm10 = vweird.f32 %v533_v57 }
 0x1eb   : > { %vm552_vm11 = vmor %vm550_vm10, %vm551_vm9  ;;  %s566_s3 = sld [smem:[#allocation2]]  ;;  %s828_s12 = sshll.u32 %s1128_s14, 4 }
 0x1ec   : > { %v549_v5 = vmul.f32 %v912_v62, %v548_v4  ;;  %s304_s26 = scalar_lea.vmem %s1249_s4, %s828_s12 }
 0x1ee   : > { %v553_v6 = vsel %vm552_vm11, %v912_v62, %v549_v5 }
 0x1ef   : > { %561 = vperm.xlu0 %904, %v553_v6  }
 0x1f1   : > { %v569_v9 = vstv %s566_s3 }
 0x22e   : > { %v523_v7 = vpop.permute.xlu0 %522 }
 0x22f   : > { %v530_v8 = vsub.f32 %v1146_v17, %v523_v7 }
 0x234   : > { %v557_v10 = vpop.permute.xlu2 %556 }
 0x235   : > { %v564_v11 = vmul.f32 %v557_v10, %v530_v8 }
 0x236   : > { %v528_v15 = vpop.permute.xlu1 %527 }
 0x237   : > { %vm567_vm12 = vcmp.ge.f32.partialorder %v564_v11, 0.0  ;;  %v570_v12 = vmul.f32 %v569_v9, %v564_v11  ;;  %v531_v16 = vsub.f32 %v1140_v13, %v528_v15 }
 0x239   : > { %v572_v14 = vsel %vm567_vm12, %v564_v11, %v570_v12 }
 0x23a   : > { %574 = vst.msk [vmem:[%s304_s26] sm:$0xff] %vm391_vm1, %v572_v14 }
 0x261   : > { %v562_v18 = vpop.permute.xlu0 %561 }
 0x262   : > { %v565_v19 = vmul.f32 %v562_v18, %v531_v16 }
 0x264   : > { %vm568_vm13 = vcmp.ge.f32.partialorder %v565_v19, 0.0  ;;  %v571_v17 = vmul.f32 %v569_v9, %v565_v19 }
 0x266   : > { %v573_v20 = vsel %vm568_vm13, %v565_v19, %v571_v17 }
 0x267   : > { %575 = vst.msk [vmem:[%s304_s26 + $0x8] sm:$0xff] %vm391_vm1, %v573_v20 }
 0x268 PF: > { %p850_p4 = scmp.ge.s32.totalorder %s1023_s28, 2  ;;  %s655_s0 = sand.u32 1, %s1003_s23  }
 0x269   : > { %s656_s14 = scalar_lea.sflag [#allocation4], %s655_s0 }
 0x26a   : > { %p844_p0 = pnand %p850_p4, %p1115_p8 }
 0x26c   : > { %p845_p1 = pneg %p844_p0 }
 0x26e   : > { %994 = dma.done.wait (%p845_p1), %s656_s14, 256  }
 0x26f   : > { %996 = vsyncadd (%p845_p1), %s656_s14, 4294967040  ;;  %s666_s13 = scalar_lea.sflag [#allocation6], %s655_s0 }
 0x270   : > { %998 = dma.done.wait (%p845_p1), %s666_s13, 256  }
 0x271   : > { %1000 = vsyncadd (%p845_p1), %s666_s13, 4294967040  ;;  %s24_s28 = sadd.s32 1, %s1023_s28   ;;  %s1256_s23 = smov %s1007_s24 }
 0x272   : > { %p21_p2 = scmp.ge.s32.totalorder %s24_s28, 4   ;;  %s1257_s24 = smov %s1011_s25 }
 0x273   : > { %s1258_s25 = smov %s1121_s11  ;;  %s1259_s26 = smov %s1019_s27 }
 0x274   : > { %s1260_s27 = smov %s1262_s30  ;;  %23 = sbr.rel (!%p21_p2) target bundleno = 9 (0x9), region = 100 }
 0x279   :  { %672 = vsyncpa [#allocation4], 1 }
 0x27a   :  { %674 = vsyncpa [#allocation4 + $0x1], 1 }
 0x27b   :  { %675 = vsyncpa [#allocation6], 1 }
 0x27c   :  { %677 = vsyncpa [#allocation6 + $0x1], 1 }

// kernel: tile.17
= control target key start
LH: loop header
LB: loop body
LE: loop exit
PB: predicated region body
PF: predicated region fallthrough
CT: control target
= control target key end

     0   :  { %s20_s0 = inlined_call_operand.<no memory space> [shape: f32[], index: 0, kind: input, shape index: {}]   ;;  %s21_s1 = inlined_call_operand.vmem [shape: f32[4,1], index: 1, kind: output, shape index: {}]  }
   0x1   :  { %v2_v0 = vstv %s20_s0 }
   0x2   :  { %3 = vst [vmem:[%s21_s1] sm:$0xf] %v2_v0 }

// kernel: unet_forward.9
= control target key start
LH: loop header
LB: loop body
LE: loop exit
PB: predicated region body
PF: predicated region fallthrough
CT: control target
= control target key end

     0   :  { %s892_s0 = inlined_call_operand.vmem [shape: bf16[2,32,64], index: 0, kind: input, shape index: {}]   ;;  %s893_s1 = inlined_call_operand.vmem [shape: bf16[4,32], index: 1, kind: input, shape index: {}]   ;;  %s894_s2 = inlined_call_operand.vmem [shape: f32[4,1], index: 2, kind: input, shape index: {}]   ;;  %s895_s3 = inlined_call_operand.<no memory space> [shape: f32[1], index: 3, kind: input, shape index: {}]   ;;  %s896_s4 = inlined_call_operand.vmem [shape: f32[2,4,64], index: 4, kind: output, shape index: {0}]   ;;  %s897_s5 = inlined_call_operand.hbm [shape: f32[2,4,1], index: 5, kind: output, shape index: {1}]   ;;  %s898_s6 = inlined_call_operand.hbm [shape: f32[2,4,1], index: 6, kind: output, shape index: {2}]  }
   0x1   :  { %899 = sst [smem:[#allocation9_spill]] %s892_s0 }
   0x2   :  { %900 = sst [smem:[#allocation10_spill]] %s893_s1 }
   0x3   :  { %13 = vsyncpa [#allocation4], 0 }
   0x4   :  { %15 = vsyncpa [#allocation4 + $0x1], 0 }
   0x5   :  { %16 = vsyncpa [#allocation6], 0 }
   0x6   :  { %18 = vsyncpa [#allocation6 + $0x1], 0  ;;  %s764_s21 = smov 0   ;;  %s766_s22 = smov 0  }
   0x7   :  { %s768_s23 = smov 0   ;;  %s770_s3 = smov 0  }
   0x8   :  { %s772_s24 = smov 0   ;;  %s774_s25 = smov 0  }
   0x9 LB: > { %s528_s26 = sadd.s32 4294967295, %s726_s25   ;;  %s529_s27 = sadd.s32 4294967294, %s726_s25   ;;  %s726_s25 = sphi %s774_s25, %s24_s25   ;;  %s722_s24 = sphi %s772_s24, %s909_s24   ;;  %s718_s3 = sphi %s770_s3, %s908_s3   ;;  %s714_s23 = sphi %s768_s23, %s907_s23   ;;  %s710_s22 = sphi %s766_s22, %s906_s22   ;;  %s706_s21 = sphi %s764_s21, %s905_s21  }
   0xa   : > { %s36_s28 = sadd.s32 1, %s722_s24  ;;  %s162_s29 = sadd.s32 1, %s714_s23 }
   0xb   : > { %p38_p0 = scmp.ge.s32.totalorder %s36_s28, 2  ;;  %p172_p1 = scmp.ne.s32.totalorder %s714_s23, %s710_s22 }
   0xc   : > { %p173_p2 = scmp.eq.s32.totalorder %s528_s26, 1  ;;  %p178_p3 = scmp.ne.s32.totalorder %s710_s22, %s706_s21 }
   0xd   : > { %s911_s28 = smov (%p38_p0, %s36_s28), 0  ;;  %p179_p5 = scmp.eq.s32.totalorder %s529_s27, 1 }
   0xe   : > { %p804_p4 = por %p173_p2, %p172_p1  ;;  %s159_s7 = ssub.s32 %s722_s24, %s911_s28 }
   0xf   : > { %p532_p6 = scmp.ge.s32.totalorder %s726_s25, 1  ;;  %p160_p7 = scmp.eq.s32.totalorder %s159_s7, 0 }
  0x10   : > { %p811_p8 = por %p179_p5, %p178_p3  ;;  %p243_p9 = scmp.lt.s32.totalorder %s726_s25, 3 }
  0x11   : > { %s817_s9 = scalar_select %p160_p7, %s714_s23, %s162_s29  }
  0x12   : > { %p244_p10 = pnand %p532_p6, %p243_p9 }
  0x13   : > { %p288_p11 = scmp.lt.s32.totalorder (!%p244_p10), %s718_s3, 1  ;;  %s903_s0 = sld [smem:[#allocation9_spill]] (!%p244_p10) }
  0x14   : > { %247 = sbr.rel (%p244_p10) target bundleno = 171 (0xab), region = 36  ;;  %s904_s1 = sld [smem:[#allocation10_spill]] (!%p244_p10) }
  0x15   : > { %s834_s19 = sand.u32 (!%p244_p10), 1, %s710_s22   ;;  %s547_s26 = sshll.u32 (!%p244_p10), %s718_s3, 2 }
  0x16   : > { %s545_s20 = sshll.u32 (!%p244_p10), %s834_s19, 2  ;;  %s372_s7 = scalar_lea.hbm (!%p244_p10), %s897_s5, %s547_s26 }
  0x17   : > { %s357_s10 = scalar_lea.vmem (!%p244_p10), [#allocation3], %s545_s20  ;;  %s354_s14 = scalar_lea.sflag (!%p244_p10), [#allocation4], %s834_s19 }
  0x18   : > { %s374_s11 = sshll.u32 (!%p244_p10), %s357_s10, 4  ;;  %s375_s11 = int_to_ptr.vmem [resolvable:$true] %s374_s11 }
  0x19   : > { %v728_v0 = vmov 0   ;;  %v309_v1 = vld [vmem:[%s894_s2] sm:$0xf]  ;;  %s824_s12 = scalar_select %p288_p11, %s718_s3, 1  ;;  %vm327_vm0 = vcmask 261120  }
  0x1a   : > { %615 = vset.pattern.permute.xlu0 %v728_v0  ;;  %v304_v4 = vld [vmem:[%s904_s1] sm:$0x3]  ;;  %s636_s3 = scalar_lea.hbm %s897_s5, 8 }
  0x1b   : > { %312 = vperm.xlu0 %615, %v309_v1   ;;  %s551_s13 = sshll.u32 %s824_s12, 4 }
  0x1c   : > { %s295_s16 = scalar_lea.vmem %s903_s0, %s551_s13  ;;  %s376_s13 = sshll.u32 %s372_s7, 4  ;;  %s377_s13 = int_to_ptr.hbm [resolvable:$true] %s376_s13 }
  0x1d   : > { %v553_v2 = vld [vmem:[%s295_s16 + $0x8] sm:$0xff]  ;;  %v552_v3 = vld [vmem:[%s295_s16] sm:$0xff]  ;;  %s630_s15 = sshra.s32 %s377_s13, 4  ;;  %s631_s15 = int_to_ptr.hbm [resolvable:$true] %s630_s15 }
  0x1e   : > { %337 = vmatpush.bf16.msra.mxu0 %v553_v2  ;;  %s632_s16 = scalar_lea.hbm %s631_s15, 4  ;;  %p637_p1 = scmp.lt.s32.totalorder %s631_s15, %s897_s5 }
  0x1f   : > { %p633_p12 = scmp.ne.s32.totalorder %s631_s15, %s632_s16  ;;  %p638_p2 = scmp.lt.s32.totalorder %s636_s3, %s632_s16 }
  0x21   : > { %p634_p13 = pnand %p633_p12, %p804_p4  ;;  %p639_p3 = por %p638_p2, %p637_p1 }
  0x22   : > { %338 = vmatpush.bf16.msra.mxu0 %v552_v3 }
  0x23   : > { %p635_p0 = pneg %p634_p13 }
  0x25   : > { %544 = vmatmul.msk.bf16.vlgmr.msra.gmra.mxu0 %vm327_vm0, %v304_v4  ;;  %p640_p5 = pnand %p639_p3, %p635_p0 }
  0x27   : > { %643 = shalt.err (!%p640_p5)
}
  0x28   : > { %554 = dma.vmem_to_hbm [thread:$0]  (%p804_p4), %s375_s11, 64, %s377_s13, %s354_s14  }
  0x29   : > { %s386_s10 = scalar_lea.hbm %s898_s6, %s547_s26  ;;  %s362_s1 = scalar_lea.vmem [#allocation5], %s545_s20 }
  0x2a   : > { %s388_s17 = sshll.u32 %s362_s1, 4  ;;  %s390_s18 = sshll.u32 %s386_s10, 4  ;;  %s389_s17 = int_to_ptr.vmem [resolvable:$true] %s388_s17  ;;  %s391_s18 = int_to_ptr.hbm [resolvable:$true] %s390_s18 }
  0x2b   : > { %s359_s0 = scalar_lea.sflag [#allocation6], %s834_s19  ;;  %s658_s15 = sshra.s32 %s391_s18, 4  ;;  %s659_s15 = int_to_ptr.hbm [resolvable:$true] %s658_s15 }
  0x2c   : > { %s660_s16 = scalar_lea.hbm %s659_s15, 4  ;;  %s664_s11 = scalar_lea.hbm %s898_s6, 8 }
  0x2d   : > { %p661_p6 = scmp.ne.s32.totalorder %s659_s15, %s660_s16  ;;  %p665_p10 = scmp.lt.s32.totalorder %s659_s15, %s898_s6 }
  0x2e   : > { %p666_p11 = scmp.lt.s32.totalorder %s664_s11, %s660_s16 }
  0x2f   : > { %p662_p7 = pnand %p661_p6, %p804_p4 }
  0x30   : > { %p667_p12 = por %p666_p11, %p665_p10 }
  0x31   : > { %p663_p9 = pneg %p662_p7 }
  0x33   : > { %p668_p13 = pnand %p667_p12, %p663_p9 }
  0x35   : > { %671 = shalt.err (!%p668_p13)
}
  0x36   : > { %555 = dma.vmem_to_hbm [thread:$0]  (%p804_p4), %s389_s17, 64, %s391_s18, %s359_s0   ;;  %vm344_vm1 = vcmask 519168  }
  0x37   : > { %s535_s1 = sshll.u32 %s824_s12, 2 }
  0x38   : > { %s302_s26 = scalar_lea.vmem %s896_s4, %s535_s1 }
  0x8d   : > { %v313_v5 = vpop.permute.xlu0 %312 }
  0xa2   : > { %v340_v6 = vpop.f32.mrf.mxu0 }
  0xa3   : > { %v341_v7 = vadd.f32 %v340_v6, %v313_v5 }
  0xa5   : > { %345 = vst.msk [vmem:[%s302_s26] sm:$0xf] %vm344_vm1, %v341_v7 }
  0xaa   : > { %v342_v8 = vpop.f32.mrf.mxu0 }
  0xab PF: > { %p565_p0 = scmp.ge.s32.totalorder %s726_s25, 2  ;;  %s412_s29 = sand.u32 1, %s706_s21  }
  0xac   : > { %s413_s30 = scalar_lea.sflag [#allocation4], %s412_s29 }
  0xad   : > { %p559_p1 = pnand %p565_p0, %p811_p8 }
  0xaf   : > { %p560_p4 = pneg %p559_p1 }
  0xb1   : > { %697 = dma.done.wait (%p560_p4), %s413_s30, 64  }
  0xb2   : > { %699 = vsyncadd (%p560_p4), %s413_s30, 4294967232  ;;  %s423_s12 = scalar_lea.sflag [#allocation6], %s412_s29 }
  0xb3   : > { %701 = dma.done.wait (%p560_p4), %s423_s12, 64  }
  0xb4   : > { %703 = vsyncadd (%p560_p4), %s423_s12, 4294967232  ;;  %s24_s25 = sadd.s32 1, %s726_s25   ;;  %s905_s21 = smov %s710_s22 }
  0xb5   : > { %p21_p2 = scmp.ge.s32.totalorder %s24_s25, 4   ;;  %s906_s22 = smov %s714_s23 }
  0xb6   : > { %s907_s23 = smov %s817_s9  ;;  %s908_s3 = smov %s722_s24 }
  0xb7   : > { %s909_s24 = smov %s911_s28  ;;  %23 = sbr.rel (!%p21_p2) target bundleno = 9 (0x9), region = 100 }
  0xbc   :  { %429 = vsyncpa [#allocation4], 1 }
  0xbd   :  { %431 = vsyncpa [#allocation4 + $0x1], 1 }
  0xbe   :  { %432 = vsyncpa [#allocation6], 1 }
  0xbf   :  { %434 = vsyncpa [#allocation6 + $0x1], 1 }

</bundles_post_ra>
